<compile_context>
chip_gen: v7x
topology: tpu7x:2x2x1
jax: 0.10.0
libtpu: 0.0.40
codegen_flags: <defaults>
</compile_context>

<pallas_src>
import functools
import numpy as np

import jax
import jax.numpy as jnp
from jax import lax
from jax.experimental import pallas as pl
from jax.experimental.pallas import tpu as pltpu


# ------------------------------- Pallas kernel -------------------------------

def _patch_match_kernel(n_inner, tpi, xc_ref, snT_ref, idx_ref, best_s):
    """Streaming argmax over style patches.

    xc_ref  : (TL, CK)   bf16  content patches, one L tile
    snT_ref : (CK, TPB)  bf16  normalized style patches (transposed);
                               TPB = n_inner * tpi columns — the whole padded P
                               when the style dictionary fits VMEM (fetched once
                               per batch), else one streamed P block.
    idx_ref : (TL, 1)    int32 running best index (output-resident over P axis)
    best_s  : (TL, 1)    f32   running best score  (VMEM scratch)
    """
    p = pl.program_id(2)
    tpb = n_inner * tpi

    @pl.when(p == 0)
    def _init():
        best_s[...] = jnp.full_like(best_s, -jnp.inf)
        idx_ref[...] = jnp.zeros_like(idx_ref)

    xc = xc_ref[...]                                        # (TL, CK) bf16
    base = p * tpb
    # Static unroll over inner chunks: the per-chunk load keeps only one
    # (TL, tpi) f32 score tile live; slices are static and 128-aligned.
    for j in range(n_inner):
        snT_chunk = snT_ref[:, j * tpi:(j + 1) * tpi]       # (CK, tpi) bf16
        score = jnp.dot(xc, snT_chunk,
                        preferred_element_type=jnp.float32)  # MXU, f32 acc
        col = base + j * tpi + lax.broadcasted_iota(jnp.int32, score.shape, 1)
        chunk_max = jnp.max(score, axis=1, keepdims=True)            # (TL, 1)
        chunk_arg = jnp.min(
            jnp.where(score >= chunk_max, col, jnp.int32(2 ** 30)),
            axis=1, keepdims=True)                                   # (TL, 1)
        # Strictly-greater update: earlier chunks win exact ties, so the global
        # winner is the *first* argmax, matching torch.argmax.
        better = chunk_max > best_s[...]
        idx_ref[...] = jnp.where(better, chunk_arg, idx_ref[...])
        best_s[...] = jnp.where(better, chunk_max, best_s[...])


def _round_up(x, m):
    return ((x + m - 1) // m) * m


def _cdiv(a, b):
    return -(-a // b)


def _tpu_vmem_capacity():
    cap = 64 * 1024 * 1024            # conservative default = v7x per-TC VMEM
    try:
        cap = int(getattr(pltpu.get_tpu_info(), "vmem_capacity_bytes", cap))
    except Exception:
        pass
    return cap


def patch_match_pallas(xc, snT, *, tl=512, tpi=512, vmem_budget_bytes=None):
    """Streaming patch-score argmax.

    xc  : (B, L, CK) content patches of the padded whitened content
    snT : (B, CK, P) L2-normalized style patches, transposed
    returns (B, L) int32: index of the best-matching style patch per location.

    Tiling: TL=512 is a good default on v5e/v6e/v7x (arithmetic intensity of
    the snT stream is exactly TL flops/byte, so do NOT shrink it on v5e; it
    only matters at all when snT has to be streamed).  tpi is the inner MXU
    chunk width (multiple of 128).  The style dictionary is made VMEM-resident
    whenever it fits the per-chip budget (derived from pltpu.get_tpu_info(),
    ~70% of physical VMEM), which makes the kernel MXU-bound on all
    generations; otherwise it streams double-buffered P blocks (the documented
    v7x fallback).
    """
    B, L, CK = xc.shape
    P = snT.shape[-1]

    vmem_cap = _tpu_vmem_capacity()
    if vmem_budget_bytes is None:
        vmem_budget_bytes = int(0.70 * vmem_cap)

    TL = _round_up(min(tl, _round_up(L, 8)), 8)
    # v7x megacore: keep >= 2 (batch x L-tile) work items so the two "parallel"
    # grid axes can shard across both TensorCores.
    if B * _cdiv(L, TL) < 2 and L > 8:
        TL = _round_up(_cdiv(L, 2), 8)
    TPI = _round_up(min(tpi, _round_up(P, 128)), 128)

    # ---- VMEM budgeting: resident snT if it fits, else stream P blocks. ----
    xc_blk_bytes = TL * CK * 2                     # bf16
    snT_chunk_bytes = CK * TPI * 2                 # bf16
    # xc double buffer + out double buffer + scratch + (TL,TPI) f32 score
    # intermediates + headroom for compiler internals.
    fixed_bytes = 2 * xc_blk_bytes + 3 * TL * 4 + 4 * TL * TPI * 4 + (2 << 20)
    n_chunks = _cdiv(P, TPI)
    # Conservative: assume the snT block is double-buffered by the pipeline.
    # TODO(synk): single-buffer the resident snT block (pl.Buffered(1) or a
    # one-time manual make_async_copy) to halve this and keep large styles
    # resident on v7x's 64 MiB/TC VMEM as well.
    n_inner_max = max(1, int((vmem_budget_bytes - fixed_bytes)
                             // (2 * snT_chunk_bytes)))
    n_inner_max = min(n_inner_max, n_chunks)
    n_outer = _cdiv(n_chunks, n_inner_max)         # P-axis grid extent
    n_inner = _cdiv(n_chunks, n_outer)             # chunks per snT block
    TPB = n_inner * TPI
    Lp = _round_up(L, TL)
    Pp = n_outer * TPB

    # bf16 inputs: halves DMA bytes and runs the score matmul at bf16 MXU rate.
    xc = xc.astype(jnp.bfloat16)
    snT = snT.astype(jnp.bfloat16)
    if Lp != L:
        xc = jnp.pad(xc, ((0, 0), (0, Lp - L), (0, 0)))
    if Pp != P:
        # Edge-pad along P: padded columns duplicate the last real patch, can
        # only *tie* it, and the min-index tie-break then never selects them —
        # so no per-step (TL,TP) -inf masking is needed inside the kernel.
        snT = jnp.pad(snT, ((0, 0), (0, 0), (0, Pp - P)), mode="edge")

    grid = (B, Lp // TL, n_outer)
    kernel = functools.partial(_patch_match_kernel, n_inner, TPI)

    cost = pl.CostEstimate(
        flops=2 * B * Lp * CK * Pp,
        transcendentals=0,
        bytes_accessed=(2 * B * Lp * CK                         # xc, read once
                        + 2 * B * CK * Pp * (1 if n_outer == 1 else Lp // TL)
                        + 4 * B * Lp),                          # int32 indices
    )

    idx = pl.pallas_call(
        kernel,
        out_shape=jax.ShapeDtypeStruct((B, Lp, 1), jnp.int32),
        grid_spec=pltpu.PrefetchScalarGridSpec(
            num_scalar_prefetch=0,
            grid=grid,
            in_specs=[
                pl.BlockSpec((None, TL, CK), lambda b, l, p: (b, l, 0)),
                # Block index ignores l; when n_outer == 1 it is constant per
                # batch, so the whole style dictionary is DMA'd once per batch
                # and stays VMEM-resident across every L tile.
                pl.BlockSpec((None, CK, TPB), lambda b, l, p: (b, 0, p)),
            ],
            out_specs=pl.BlockSpec((None, TL, 1), lambda b, l, p: (b, l, 0)),
            scratch_shapes=[pltpu.VMEM((TL, 1), jnp.float32)],
        ),
        compiler_params=pltpu.CompilerParams(
            dimension_semantics=("parallel", "parallel", "arbitrary"),
            vmem_limit_bytes=int(min(100 * 2 ** 20,
                                     max(32 * 2 ** 20, 0.9 * vmem_cap))),
        ),
        cost_estimate=cost,
    )(xc, snT)
    return idx[:, :L, 0]                                        # (B, L)


# ------------------------------- JAX glue ------------------------------------

def whitening(x):
    # ZCA whitening per sample over the channel covariance (Avatar-Net style).
    B, C, H, W = x.shape
    n = H * W
    xf = x.reshape(B, C, n)
    mean = jnp.mean(xf, axis=2, keepdims=True)
    xc = xf - mean
    cov = jnp.einsum('bcn,bdn->bcd', xc, xc) / (n - 1)
    evals, evecs = jnp.linalg.eigh(cov)
    inv_sqrt = jnp.einsum('bij,bj,bkj->bik', evecs,
                          1.0 / jnp.sqrt(jnp.maximum(evals, 1e-8)), evecs)
    return jnp.einsum('bij,bjn->bin', inv_sqrt, xc).reshape(B, C, H, W)


def coloring(x, target):
    B, C, H, W = x.shape
    n = H * W
    xf = x.reshape(B, C, n)
    tf = target.reshape(B, C, n)
    tmean = jnp.mean(tf, axis=2, keepdims=True)
    tc = tf - tmean
    cov = jnp.einsum('bcn,bdn->bcd', tc, tc) / (n - 1)
    evals, evecs = jnp.linalg.eigh(cov)
    sqrt_cov = jnp.einsum('bij,bj,bkj->bik', evecs,
                          jnp.sqrt(jnp.maximum(evals, 0.0)), evecs)
    return (jnp.einsum('bij,bjn->bin', sqrt_cov, xf) + tmean).reshape(B, C, H, W)


def _content_patches(x, k):
    # (B, C, H, W) whitened content -> (B, H*W, C*k*k), column order (c, dy, dx).
    # Feed a bf16 x to halve the prologue HBM traffic.
    # TODO(synk): fuse patch extraction into the kernel (9 shifted loads of the
    # padded whitened image) to avoid materializing the 9x-expanded xc in HBM.
    B, C, H, W = x.shape
    pad = (k - 1) // 2
    xp = jnp.pad(x, ((0, 0), (0, 0), (pad, pad), (pad, pad)))
    cols = jnp.stack([xp[:, :, dy:dy + H, dx:dx + W]
                      for dy in range(k) for dx in range(k)], axis=2)  # (B,C,kk,H,W)
    return cols.transpose(0, 3, 4, 1, 2).reshape(B, H * W, C * k * k)


def _style_patches(s, k):
    # extract_patches + kernel_normalize:
    #   snT  (B, C*k*k, P)  normalized patches (transposed), column order (c,dy,dx)
    #   sall (B, P, k*k*C)  raw patches, column order (dy,dx,c)
    B, C, H, W = s.shape
    nh, nw = H - k + 1, W - k + 1
    P = nh * nw
    cols = jnp.stack([s[:, :, dy:dy + nh, dx:dx + nw]
                      for dy in range(k) for dx in range(k)], axis=2)  # (B,C,kk,nh,nw)
    sp = cols.reshape(B, C, k * k, P).transpose(0, 3, 1, 2)            # (B,P,C,kk)
    s_cmaj = sp.reshape(B, P, C * k * k)
    norm = jnp.sqrt(jnp.sum(s_cmaj * s_cmaj, axis=2, keepdims=True))
    snT = (s_cmaj / norm).transpose(0, 2, 1)                           # (B,CK,P)
    sall = sp.transpose(0, 1, 3, 2).reshape(B, P, k * k * C)           # (B,P,kk*C)
    return snT, sall


def _overlap_add(sel, H, W, k):
    # conv_transpose2d overlap-add of the selected raw style patches.
    # sel: (B, H*W, kk*C), column order (dy, dx, c). Exact f32, 9 shifted adds.
    B, L, KC = sel.shape
    kk = k * k
    C = KC // kk
    pad = (k - 1) // 2
    sel_img = sel.reshape(B, H, W, kk, C)
    padded = jnp.pad(sel_img, ((0, 0), (pad, pad), (pad, pad), (0, 0), (0, 0)))
    out = jnp.zeros((B, H, W, C), sel.dtype)
    for dy in range(k):
        for dx in range(k):
            t = dy * k + dx
            ys, xs = (k - 1) - dy, (k - 1) - dx
            out = out + padded[:, ys:ys + H, xs:xs + W, t, :]
    return out


def _deconv_norm(H, W, k):
    # norm_deconvolution counts (shape-only constant).
    pad = (k - 1) // 2
    ry = np.array([sum(0 <= y + pad - dy < H for dy in range(k))
                   for y in range(H)], np.float32)
    rx = np.array([sum(0 <= x + pad - dx < W for dx in range(k))
                   for x in range(W)], np.float32)
    return jnp.asarray(np.outer(ry, rx))                              # (H, W)


def style_decorator_forward(content, style, style_strength=0.2,
                            patch_size=3, patch_stride=1):
    assert patch_stride == 1, "only patch_stride=1 supported (module default)"
    B, C, H, W = content.shape
    k = patch_size

    wc = whitening(content)
    ws = whitening(style)

    # Content patches built directly in bf16 (kernel input dtype).
    xc = _content_patches(wc.astype(jnp.bfloat16), k)  # (B, L, CK) bf16
    snT, sall = _style_patches(ws, k)                   # (B, CK, P), (B, P, kk*C)

    idx = patch_match_pallas(xc, snT)                   # (B, L) int32
    sel = jnp.take_along_axis(sall, idx[:, :, None], axis=1)   # (B, L, kk*C) f32

    out = _overlap_add(sel, H, W, k)                    # (B, H, W, C)
    out = out / _deconv_norm(H, W, k)[None, :, :, None]
    reassembled = out.transpose(0, 3, 1, 2)             # (B, C, H, W)

    stylized = coloring(reassembled, style)
    return (1.0 - style_strength) * content + style_strength * stylized


if __name__ == "__main__":
    key = jax.random.PRNGKey(0)
    k1, k2 = jax.random.split(key)
    content = jax.random.normal(k1, (2, 4, 16, 16), dtype=jnp.float32)
    style = jax.random.normal(k2, (2, 4, 16, 16), dtype=jnp.float32)

    # Full forward (resident snT, single L / P tile at this toy size).
    result = style_decorator_forward(content, style)
    result = jax.block_until_ready(result)
    assert result.shape == content.shape and result.dtype == jnp.float32
    assert bool(jnp.all(jnp.isfinite(result)))

    # Dense bf16 reference scores for the matcher.
    wc, ws = whitening(content), whitening(style)
    xc = _content_patches(wc.astype(jnp.bfloat16), 3)
    snT, _ = _style_patches(ws, 3)
    P_true = snT.shape[-1]
    score_ref = jnp.einsum('blc,bcp->blp', xc.astype(jnp.bfloat16),
                           snT.astype(jnp.bfloat16),
                           preferred_element_type=jnp.float32)
    best = jnp.max(score_ref, axis=2)

    # (a) resident snT with a 2-chunk inner loop: grid (B, 2, 1).
    idx_a = patch_match_pallas(xc, snT, tl=128, tpi=128)
    # (b) streamed snT across the P grid axis (forced small budget): grid (B, 2, 2).
    idx_b = patch_match_pallas(xc, snT, tl=128, tpi=128,
                               vmem_budget_bytes=2 * 1024 * 1024)

    for idx in (idx_a, idx_b):
        assert bool(jnp.all((idx >= 0) & (idx < P_true)))     # never a pad column
        chosen = jnp.take_along_axis(score_ref, idx[:, :, None], axis=2)[..., 0]
        assert bool(jnp.all(chosen >= best - 5e-2))
    assert bool(jnp.all(idx_a == idx_b))                      # both paths agree

    print("KERNEL_OK")
</pallas_src>

<mosaic_0001>
module attributes {stable_mosaic.version = 11 : i64} {
  func.func @_patch_match_kernel(%arg0: i32, %arg1: i32, %arg2: i32, %arg3: memref<1x256x36xbf16, #tpu.memory_space<vmem>>, %arg4: memref<1x36x256xbf16, #tpu.memory_space<vmem>>, %arg5: memref<1x256x1xi32, #tpu.memory_space<vmem>>, %arg6: memref<256x1xf32, #tpu.memory_space<vmem>>) attributes {dimension_semantics = [#tpu.dimension_semantics<parallel>, #tpu.dimension_semantics<parallel>, #tpu.dimension_semantics<arbitrary>], iteration_bounds = array<i64: 2, 1, 1>, scalar_prefetch = 0 : i64, scratch_operands = 1 : i64, tpu.core_type = #tpu.core_type<tc>, window_params = [{transform_indices = @transform_0, window_bounds = array<i64: 1, 256, 36>}, {transform_indices = @transform_1, window_bounds = array<i64: 1, 36, 256>}, {transform_indices = @transform_2, window_bounds = array<i64: 1, 256, 1>}]} {
    %c0_i32 = arith.constant 0 : i32
    %0 = arith.cmpi eq, %arg2, %c0_i32 : i32
    %1 = arith.extui %0 : i1 to i32
    %c0_i32_0 = arith.constant 0 : i32
    %2 = arith.cmpi ne, %1, %c0_i32_0 : i32
    scf.if %2 {
      %cst_21 = arith.constant 0xFF800000 : f32
      %32 = vector.broadcast %cst_21 : f32 to vector<256x1xf32>
      %c0_22 = arith.constant 0 : index
      %c0_23 = arith.constant 0 : index
      %33 = vector.load %arg6[%c0_22, %c0_23] : memref<256x1xf32, #tpu.memory_space<vmem>>, vector<256x1xf32>
      tpu.vector_store %arg6[%c0_22, %c0_23], %32 {strides = array<i32>} : memref<256x1xf32, #tpu.memory_space<vmem>>, vector<256x1xf32>,
      %c0_i32_24 = arith.constant 0 : i32
      %34 = vector.broadcast %c0_i32_24 : i32 to vector<256x1xi32>
      %c0_25 = arith.constant 0 : index
      %c0_26 = arith.constant 0 : index
      %c0_27 = arith.constant 0 : index
      %35 = vector.load %arg5[%c0_25, %c0_26, %c0_27] : memref<1x256x1xi32, #tpu.memory_space<vmem>>, vector<1x256x1xi32>
      %36 = vector.shape_cast %35 : vector<1x256x1xi32> to vector<256x1xi32>
      %37 = vector.shape_cast %34 : vector<256x1xi32> to vector<1x256x1xi32>
      tpu.vector_store %arg5[%c0_25, %c0_26, %c0_27], %37 {strides = array<i32>} : memref<1x256x1xi32, #tpu.memory_space<vmem>>, vector<1x256x1xi32>,
    } else {
    }
    %c0 = arith.constant 0 : index
    %c0_1 = arith.constant 0 : index
    %c0_2 = arith.constant 0 : index
    %3 = vector.load %arg3[%c0, %c0_1, %c0_2] : memref<1x256x36xbf16, #tpu.memory_space<vmem>>, vector<1x256x36xbf16>
    %4 = vector.shape_cast %3 : vector<1x256x36xbf16> to vector<256x36xbf16>
    %c256_i32 = arith.constant 256 : i32
    %5 = arith.muli %arg2, %c256_i32 : i32
    %c0_3 = arith.constant 0 : index
    %c0_4 = arith.constant 0 : index
    %c0_5 = arith.constant 0 : index
    %6 = vector.load %arg4[%c0_3, %c0_4, %c0_5] : memref<1x36x256xbf16, #tpu.memory_space<vmem>>, vector<1x36x256xbf16>
    %7 = vector.shape_cast %6 : vector<1x36x256xbf16> to vector<36x256xbf16>
    %cst = arith.constant dense<0.000000e+00> : vector<256x256xf32>
    %8 = tpu.matmul %4, %7, %cst {dimension_numbers = #tpu.dot_dimension_numbers<[1], [0], [0], [1], [0, 0, 1, 1], [], []>} : vector<256x36xbf16>, vector<36x256xbf16>, vector<256x256xf32> -> vector<256x256xf32>
    %c0_i32_6 = arith.constant 0 : i32
    %9 = arith.addi %5, %c0_i32_6 : i32
    %10 = tpu.iota {dimensions = array<i32: 1>} : vector<256x256xi32>
    %11 = vector.broadcast %9 : i32 to vector<256x256xi32>
    %12 = arith.addi %11, %10 : vector<256x256xi32>
    %cst_7 = arith.constant dense<0xFF800000> : vector<256xf32>
    %13 = vector.multi_reduction <maximumf>, %8, %cst_7 [1] : vector<256x256xf32> to vector<256xf32>
    %14 = vector.shape_cast %13 : vector<256xf32> to vector<256x1xf32>
    %15 = vector.broadcast %14 : vector<256x1xf32> to vector<256x256xf32>
    %16 = arith.cmpf oge, %8, %15 : vector<256x256xf32>
    %c1073741824_i32 = arith.constant 1073741824 : i32
    %17 = vector.broadcast %c1073741824_i32 : i32 to vector<256x256xi32>
    %18 = arith.select %16, %12, %17 : vector<256x256xi1>, vector<256x256xi32>
    %cst_8 = arith.constant dense<2147483647> : vector<256xi32>
    %19 = vector.multi_reduction <minsi>, %18, %cst_8 [1] : vector<256x256xi32> to vector<256xi32>
    %20 = vector.shape_cast %19 : vector<256xi32> to vector<256x1xi32>
    %c0_9 = arith.constant 0 : index
    %c0_10 = arith.constant 0 : index
    %21 = vector.load %arg6[%c0_9, %c0_10] : memref<256x1xf32, #tpu.memory_space<vmem>>, vector<256x1xf32>
    %22 = arith.cmpf ogt, %14, %21 : vector<256x1xf32>
    %c0_11 = arith.constant 0 : index
    %c0_12 = arith.constant 0 : index
    %c0_13 = arith.constant 0 : index
    %23 = vector.load %arg5[%c0_11, %c0_12, %c0_13] : memref<1x256x1xi32, #tpu.memory_space<vmem>>, vector<1x256x1xi32>
    %24 = vector.shape_cast %23 : vector<1x256x1xi32> to vector<256x1xi32>
    %25 = arith.select %22, %20, %24 : vector<256x1xi1>, vector<256x1xi32>
    %c0_14 = arith.constant 0 : index
    %c0_15 = arith.constant 0 : index
    %c0_16 = arith.constant 0 : index
    %26 = vector.load %arg5[%c0_14, %c0_15, %c0_16] : memref<1x256x1xi32, #tpu.memory_space<vmem>>, vector<1x256x1xi32>
    %27 = vector.shape_cast %26 : vector<1x256x1xi32> to vector<256x1xi32>
    %28 = vector.shape_cast %25 : vector<256x1xi32> to vector<1x256x1xi32>
    tpu.vector_store %arg5[%c0_14, %c0_15, %c0_16], %28 {strides = array<i32>} : memref<1x256x1xi32, #tpu.memory_space<vmem>>, vector<1x256x1xi32>,
    %c0_17 = arith.constant 0 : index
    %c0_18 = arith.constant 0 : index
    %29 = vector.load %arg6[%c0_17, %c0_18] : memref<256x1xf32, #tpu.memory_space<vmem>>, vector<256x1xf32>
    %30 = arith.select %22, %14, %29 : vector<256x1xi1>, vector<256x1xf32>
    %c0_19 = arith.constant 0 : index
    %c0_20 = arith.constant 0 : index
    %31 = vector.load %arg6[%c0_19, %c0_20] : memref<256x1xf32, #tpu.memory_space<vmem>>, vector<256x1xf32>
    tpu.vector_store %arg6[%c0_19, %c0_20], %30 {strides = array<i32>} : memref<256x1xf32, #tpu.memory_space<vmem>>, vector<256x1xf32>,
    return
  }
  func.func @transform_0(%arg0: i32, %arg1: i32, %arg2: i32) -> (i32, i32, i32) {
    %c0_i32 = arith.constant 0 : i32
    %c0_i32_0 = arith.constant 0 : i32
    return %arg0, %arg1, %c0_i32 : i32, i32, i32
  }
  func.func @transform_1(%arg0: i32, %arg1: i32, %arg2: i32) -> (i32, i32, i32) {
    %c0_i32 = arith.constant 0 : i32
    %c0_i32_0 = arith.constant 0 : i32
    return %arg0, %c0_i32, %arg2 : i32, i32, i32
  }
  func.func @transform_2(%arg0: i32, %arg1: i32, %arg2: i32) -> (i32, i32, i32) {
    %c0_i32 = arith.constant 0 : i32
    %c0_i32_0 = arith.constant 0 : i32
    return %arg0, %arg1, %c0_i32 : i32, i32, i32
  }
}

</mosaic_0001>

<bundles_post_ra>
// kernel: tpu_custom_call.1
= control target key start
LH: loop header
LB: loop body
LE: loop exit
PB: predicated region body
PF: predicated region fallthrough
CT: control target
= control target key end

     0   :  { %s1946_s9 = smov 0   ;;  %s1948_s10 = smov 0   ;;  %s3681_s0 = inlined_call_operand.vmem [shape: bf16[2,256,36], index: 0, kind: input, shape index: {}]   ;;  %s3682_s1 = inlined_call_operand.vmem [shape: bf16[2,36,256], index: 1, kind: input, shape index: {}]   ;;  %s3683_s2 = inlined_call_operand.vmem [shape: s32[2,256,1], index: 2, kind: output, shape index: {}]  }
   0x1   :  { %s1950_s11 = smov 0  }
   0x2 LB: > { %s31_s12 = sadd.s32 1, %s1923_s10  ;;  %p1799_p0 = scmp.ge.s32.totalorder %s1927_s11, 1  ;;  %s1927_s11 = sphi %s1950_s11, %s12_s11   ;;  %s1923_s10 = sphi %s1948_s10, %s4014_s10   ;;  %s1919_s9 = sphi %s1946_s9, %s4013_s9  }
   0x3   : > { %p33_p1 = scmp.ge.s32.totalorder %s31_s12, 2  ;;  %p157_p2 = scmp.lt.s32.totalorder %s1927_s11, 3 }
   0x5   : > { %s4016_s12 = smov (%p33_p1, %s31_s12), 0  ;;  %p158_p3 = pnand %p1799_p0, %p157_p2 }
   0x7   : > { %161 = sbr.rel (%p158_p3) target bundleno = 775 (0x307), region = 28 }
   0xe   : > { %p197_p4 = scmp.lt.s32.totalorder %s1919_s9, 1  ;;  %v1929_v0 = vmov 0   ;;  %vm488_vm0 = vcmask 1041408   ;;  %vm439_vm1 = vcmask 293888   ;;  %vm231_vm2 = vcmask 7168  }
   0xf   : > { %527 = vmatprep.mubr.bf16.mxu0 %v1929_v0  ;;  %607 = vmatprep.mubr.bf16.mxu1 %v1929_v0  ;;  %v1930_v25 = vmov -inf  }
  0x10   : > { %s4018_s9 = smov (!%p197_p4, %s1919_s9), 1  ;;  %232 = vst.msk [vmem:[#allocation2] sm:$0xff] %vm231_vm2, %v1930_v25  ;;  %233 = vst.msk [vmem:[#allocation2 + $0x8] sm:$0xff] %vm231_vm2, %v1930_v25 }
  0x11   : > { %s1846_s13 = sshll.u32 %s4018_s9, 7  ;;  %s1854_s14 = smul.u32 40, %s4018_s9  ;;  %234 = vst.msk [vmem:[#allocation2 + $0x10] sm:$0xff] %vm231_vm2, %v1930_v25  ;;  %235 = vst.msk [vmem:[#allocation2 + $0x18] sm:$0xff] %vm231_vm2, %v1930_v25 }
  0x12   : > { %s1973_s17 = scalar_lea.vmem %s3681_s0, %s1846_s13  ;;  %s1847_s21 = sshll.u32 %s4018_s9, 8  ;;  %236 = vst.msk [vmem:[#allocation2 + $0x20] sm:$0xff] %vm231_vm2, %v1930_v25  ;;  %237 = vst.msk [vmem:[#allocation2 + $0x28] sm:$0xff] %vm231_vm2, %v1930_v25 }
  0x13   : > { %s214_s20 = scalar_lea.vmem %s3682_s1, %s1854_s14  ;;  %v1889_v9 = vld [vmem:[%s1973_s17] sm:$0xff]   ;;  %v1891_v11 = vld [vmem:[%s1973_s17 + $0x8] sm:$0xff]   ;;  %v1893_v13 = vld [vmem:[%s1973_s17 + $0x10] sm:$0xff]   ;;  %s2028_s24 = scalar_lea.vmem %s3683_s2, %s1847_s21  ;;  %238 = vst.msk [vmem:[#allocation2 + $0x30] sm:$0xff] %vm231_vm2, %v1930_v25 }
  0x14   : > { %v1881_v1 = vld [vmem:[%s214_s20 + $0x4] ss:$8 sps:$4 sm:$0xff]   ;;  %v1883_v2 = vld [vmem:[%s214_s20] ss:$8 sps:$4 sm:$0xff]   ;;  %v1884_v3 = vld [vmem:[%s214_s20 + $0x14] ss:$8 sps:$4 sm:$0xff]  }
  0x15   : > { %495 = vmatprep.subr.bf16.mxu0 %v1881_v1  ;;  %1848 = vmatprep.subr.bf16.mxu1 %v1881_v1  ;;  %v333_v4 = vld [vmem:[%s214_s20 + $0x20] sm:$0x33]  ;;  %v1886_v5 = vld [vmem:[%s214_s20 + $0x10] ss:$8 sps:$4 sm:$0xff]   ;;  %v1892_v12 = vld [vmem:[%s1973_s17 + $0x48] sm:$0xff]   ;;  %239 = vst.msk [vmem:[#allocation2 + $0x38] sm:$0xff] %vm231_vm2, %v1930_v25 }
  0x16   : > { %496 = vmatpush1.bf16.msra.mxu0 %v1883_v2  ;;  %1851 = vmatpush1.bf16.msra.mxu1 %v1883_v2  ;;  %v1826_v6 = vcombine.high %v333_v4, %v333_v4  ;;  %v1825_v7 = vcombine.low %v333_v4, %v333_v4  ;;  %v1890_v10 = vld [vmem:[%s1973_s17 + $0x40] sm:$0xff]   ;;  %v1894_v14 = vld [vmem:[%s1973_s17 + $0x50] sm:$0xff]   ;;  %v1895_v15 = vld [vmem:[%s1973_s17 + $0x18] sm:$0xff]   ;;  %240 = vst.msk [vmem:[#allocation2 + $0x40] sm:$0xff] %vm231_vm2, %v1930_v25 }
  0x17   : > { %497 = vmatprep.subr.bf16.mxu0 %v1884_v3  ;;  %1849 = vmatprep.subr.bf16.mxu1 %v1884_v3  ;;  %v1896_v16 = vld [vmem:[%s1973_s17 + $0x58] sm:$0xff]   ;;  %v1897_v17 = vld [vmem:[%s1973_s17 + $0x20] sm:$0xff]   ;;  %v1899_v19 = vld [vmem:[%s1973_s17 + $0x28] sm:$0xff]   ;;  %241 = vst.msk [vmem:[#allocation2 + $0x48] sm:$0xff] %vm231_vm2, %v1930_v25 }
  0x18   : > { %v490_v8 = vsel %vm488_vm0, %v1825_v7, 0  ;;  %v1898_v18 = vld [vmem:[%s1973_s17 + $0x60] sm:$0xff]   ;;  %v1900_v20 = vld [vmem:[%s1973_s17 + $0x68] sm:$0xff]   ;;  %v1901_v21 = vld [vmem:[%s1973_s17 + $0x30] sm:$0xff]   ;;  %242 = vst.msk [vmem:[#allocation2 + $0x50] sm:$0xff] %vm231_vm2, %v1930_v25 }
  0x19   : > { %v1902_v22 = vld [vmem:[%s1973_s17 + $0x70] sm:$0xff]   ;;  %v1903_v23 = vld [vmem:[%s1973_s17 + $0x38] sm:$0xff]   ;;  %243 = vst.msk [vmem:[#allocation2 + $0x58] sm:$0xff] %vm231_vm2, %v1930_v25  ;;  %244 = vst.msk [vmem:[#allocation2 + $0x60] sm:$0xff] %vm231_vm2, %v1930_v25 }
  0x1a   : > { %498 = vmatpush1.bf16.msra.mxu0 %v1886_v5  ;;  %1852 = vmatpush1.bf16.msra.mxu1 %v1886_v5  ;;  %v1904_v24 = vld [vmem:[%s1973_s17 + $0x78] sm:$0xff]   ;;  %245 = vst.msk [vmem:[#allocation2 + $0x68] sm:$0xff] %vm231_vm2, %v1930_v25  ;;  %246 = vst.msk [vmem:[#allocation2 + $0x70] sm:$0xff] %vm231_vm2, %v1930_v25 }
  0x1b   : > { %1827 = vmatprep.subr.msk.bf16.mxu0 %vm488_vm0, %v1826_v6  ;;  %1850 = vmatprep.subr.msk.bf16.mxu1 %vm488_vm0, %v1826_v6  ;;  %247 = vst.msk [vmem:[#allocation2 + $0x78] sm:$0xff] %vm231_vm2, %v1930_v25  ;;  %248 = vst.msk [vmem:[#allocation2 + $0x80] sm:$0xff] %vm231_vm2, %v1930_v25 }
  0x1c   : > { %249 = vst.msk [vmem:[#allocation2 + $0x88] sm:$0xff] %vm231_vm2, %v1930_v25  ;;  %250 = vst.msk [vmem:[#allocation2 + $0x90] sm:$0xff] %vm231_vm2, %v1930_v25 }
  0x1d   : > { %251 = vst.msk [vmem:[#allocation2 + $0x98] sm:$0xff] %vm231_vm2, %v1930_v25  ;;  %252 = vst.msk [vmem:[#allocation2 + $0xa0] sm:$0xff] %vm231_vm2, %v1930_v25 }
  0x1e   : > { %500 = vmatpush1.bf16.msra.mxu0 %v490_v8  ;;  %1853 = vmatpush1.bf16.msra.mxu1 %v490_v8  ;;  %253 = vst.msk [vmem:[#allocation2 + $0xa8] sm:$0xff] %vm231_vm2, %v1930_v25  ;;  %254 = vst.msk [vmem:[#allocation2 + $0xb0] sm:$0xff] %vm231_vm2, %v1930_v25 }
  0x1f   : > { %255 = vst.msk [vmem:[#allocation2 + $0xb8] sm:$0xff] %vm231_vm2, %v1930_v25  ;;  %256 = vst.msk [vmem:[#allocation2 + $0xc0] sm:$0xff] %vm231_vm2, %v1930_v25 }
  0x20   : > { %257 = vst.msk [vmem:[#allocation2 + $0xc8] sm:$0xff] %vm231_vm2, %v1930_v25  ;;  %258 = vst.msk [vmem:[#allocation2 + $0xd0] sm:$0xff] %vm231_vm2, %v1930_v25 }
  0x21   : > { %1828 = vmatmul.mubr.msk.bf16.vlgmr.msra.gmra.mrb[0].mxu0 %vm439_vm1, %v1889_v9  ;;  %1836 = vmatmul.mubr.msk.bf16.vlgmr.msra.gmra.mrb[0].mxu1 %vm439_vm1, %v1890_v10  ;;  %259 = vst.msk [vmem:[#allocation2 + $0xd8] sm:$0xff] %vm231_vm2, %v1930_v25  ;;  %260 = vst.msk [vmem:[#allocation2 + $0xe0] sm:$0xff] %vm231_vm2, %v1930_v25 }
  0x22   : > { %537 = vmatprep.mubr.bf16.mxu0 %v1929_v0  ;;  %617 = vmatprep.mubr.bf16.mxu1 %v1929_v0  ;;  %261 = vst.msk [vmem:[#allocation2 + $0xe8] sm:$0xff] %vm231_vm2, %v1930_v25  ;;  %262 = vst.msk [vmem:[#allocation2 + $0xf0] sm:$0xff] %vm231_vm2, %v1930_v25 }
  0x23   : > { %263 = vst.msk [vmem:[#allocation2 + $0xf8] sm:$0xff] %vm231_vm2, %v1930_v25  ;;  %264 = vst.msk [vmem:[%s2028_s24] sm:$0xff] %vm231_vm2, %v1929_v0 }
  0x24   : > { %265 = vst.msk [vmem:[%s2028_s24 + $0x8] sm:$0xff] %vm231_vm2, %v1929_v0  ;;  %266 = vst.msk [vmem:[%s2028_s24 + $0x10] sm:$0xff] %vm231_vm2, %v1929_v0 }
  0x25   : > { %267 = vst.msk [vmem:[%s2028_s24 + $0x18] sm:$0xff] %vm231_vm2, %v1929_v0  ;;  %268 = vst.msk [vmem:[%s2028_s24 + $0x20] sm:$0xff] %vm231_vm2, %v1929_v0 }
  0x26   : > { %269 = vst.msk [vmem:[%s2028_s24 + $0x28] sm:$0xff] %vm231_vm2, %v1929_v0  ;;  %270 = vst.msk [vmem:[%s2028_s24 + $0x30] sm:$0xff] %vm231_vm2, %v1929_v0 }
  0x27   : > { %271 = vst.msk [vmem:[%s2028_s24 + $0x38] sm:$0xff] %vm231_vm2, %v1929_v0  ;;  %272 = vst.msk [vmem:[%s2028_s24 + $0x40] sm:$0xff] %vm231_vm2, %v1929_v0 }
  0x28   : > { %273 = vst.msk [vmem:[%s2028_s24 + $0x48] sm:$0xff] %vm231_vm2, %v1929_v0  ;;  %274 = vst.msk [vmem:[%s2028_s24 + $0x50] sm:$0xff] %vm231_vm2, %v1929_v0 }
  0x29   : > { %1829 = vmatmul.mubr.msk.bf16.gmra.mrb[4].mxu0 %vm439_vm1, %v1891_v11  ;;  %1837 = vmatmul.mubr.msk.bf16.gmra.mrb[4].mxu1 %vm439_vm1, %v1892_v12  ;;  %275 = vst.msk [vmem:[%s2028_s24 + $0x58] sm:$0xff] %vm231_vm2, %v1929_v0  ;;  %276 = vst.msk [vmem:[%s2028_s24 + $0x60] sm:$0xff] %vm231_vm2, %v1929_v0 }
  0x2a   : > { %547 = vmatprep.mubr.bf16.mxu0 %v1929_v0  ;;  %627 = vmatprep.mubr.bf16.mxu1 %v1929_v0  ;;  %277 = vst.msk [vmem:[%s2028_s24 + $0x68] sm:$0xff] %vm231_vm2, %v1929_v0  ;;  %278 = vst.msk [vmem:[%s2028_s24 + $0x70] sm:$0xff] %vm231_vm2, %v1929_v0 }
  0x2b   : > { %279 = vst.msk [vmem:[%s2028_s24 + $0x78] sm:$0xff] %vm231_vm2, %v1929_v0  ;;  %280 = vst.msk [vmem:[%s2028_s24 + $0x80] sm:$0xff] %vm231_vm2, %v1929_v0 }
  0x2c   : > { %281 = vst.msk [vmem:[%s2028_s24 + $0x88] sm:$0xff] %vm231_vm2, %v1929_v0  ;;  %282 = vst.msk [vmem:[%s2028_s24 + $0x90] sm:$0xff] %vm231_vm2, %v1929_v0 }
  0x2d   : > { %283 = vst.msk [vmem:[%s2028_s24 + $0x98] sm:$0xff] %vm231_vm2, %v1929_v0  ;;  %284 = vst.msk [vmem:[%s2028_s24 + $0xa0] sm:$0xff] %vm231_vm2, %v1929_v0 }
  0x2e   : > { %285 = vst.msk [vmem:[%s2028_s24 + $0xa8] sm:$0xff] %vm231_vm2, %v1929_v0  ;;  %286 = vst.msk [vmem:[%s2028_s24 + $0xb0] sm:$0xff] %vm231_vm2, %v1929_v0 }
  0x2f   : > { %287 = vst.msk [vmem:[%s2028_s24 + $0xb8] sm:$0xff] %vm231_vm2, %v1929_v0  ;;  %288 = vst.msk [vmem:[%s2028_s24 + $0xc0] sm:$0xff] %vm231_vm2, %v1929_v0 }
  0x30   : > { %289 = vst.msk [vmem:[%s2028_s24 + $0xc8] sm:$0xff] %vm231_vm2, %v1929_v0  ;;  %290 = vst.msk [vmem:[%s2028_s24 + $0xd0] sm:$0xff] %vm231_vm2, %v1929_v0 }
  0x31   : > { %1830 = vmatmul.mubr.msk.bf16.gmra.mrb[8].mxu0 %vm439_vm1, %v1893_v13  ;;  %1838 = vmatmul.mubr.msk.bf16.gmra.mrb[8].mxu1 %vm439_vm1, %v1894_v14  ;;  %291 = vst.msk [vmem:[%s2028_s24 + $0xd8] sm:$0xff] %vm231_vm2, %v1929_v0  ;;  %292 = vst.msk [vmem:[%s2028_s24 + $0xe0] sm:$0xff] %vm231_vm2, %v1929_v0 }
  0x32   : > { %557 = vmatprep.mubr.bf16.mxu0 %v1929_v0  ;;  %637 = vmatprep.mubr.bf16.mxu1 %v1929_v0  ;;  %293 = vst.msk [vmem:[%s2028_s24 + $0xe8] sm:$0xff] %vm231_vm2, %v1929_v0  ;;  %294 = vst.msk [vmem:[%s2028_s24 + $0xf0] sm:$0xff] %vm231_vm2, %v1929_v0 }
  0x33   : > { %295 = vst.msk [vmem:[%s2028_s24 + $0xf8] sm:$0xff] %vm231_vm2, %v1929_v0 }
  0x39   : > { %1831 = vmatmul.mubr.msk.bf16.gmra.mrb[12].mxu0 %vm439_vm1, %v1895_v15  ;;  %1839 = vmatmul.mubr.msk.bf16.gmra.mrb[12].mxu1 %vm439_vm1, %v1896_v16 }
  0x3a   : > { %567 = vmatprep.mubr.bf16.mxu0 %v1929_v0  ;;  %647 = vmatprep.mubr.bf16.mxu1 %v1929_v0 }
  0x41   : > { %1832 = vmatmul.mubr.msk.bf16.gmra.mrb[16].mxu0 %vm439_vm1, %v1897_v17  ;;  %1840 = vmatmul.mubr.msk.bf16.gmra.mrb[16].mxu1 %vm439_vm1, %v1898_v18 }
  0x42   : > { %577 = vmatprep.mubr.bf16.mxu0 %v1929_v0  ;;  %657 = vmatprep.mubr.bf16.mxu1 %v1929_v0 }
  0x49   : > { %1833 = vmatmul.mubr.msk.bf16.gmra.mrb[20].mxu0 %vm439_vm1, %v1899_v19  ;;  %1841 = vmatmul.mubr.msk.bf16.gmra.mrb[20].mxu1 %vm439_vm1, %v1900_v20 }
  0x4a   : > { %587 = vmatprep.mubr.bf16.mxu0 %v1929_v0  ;;  %667 = vmatprep.mubr.bf16.mxu1 %v1929_v0 }
  0x51   : > { %1834 = vmatmul.mubr.msk.bf16.gmra.mrb[24].mxu0 %vm439_vm1, %v1901_v21  ;;  %1842 = vmatmul.mubr.msk.bf16.gmra.mrb[24].mxu1 %vm439_vm1, %v1902_v22 }
  0x52   : > { %597 = vmatprep.mubr.bf16.mxu0 %v1929_v0  ;;  %677 = vmatprep.mubr.bf16.mxu1 %v1929_v0 }
  0x59   : > { %1835 = vmatmul.mubr.msk.bf16.gmra.mrb[28].mxu0 %vm439_vm1, %v1903_v23  ;;  %1843 = vmatmul.mubr.msk.bf16.gmra.mrb[28].mxu1 %vm439_vm1, %v1904_v24 }
  0xf4   : > { %v2158_v26 = vpop.f32.mrb[0].mxu0  ;;  %v2160_v27 = vpop.f32.mrb[0].mxu1 }
  0xf5   : > { %v2162_v28 = vpop.f32.mrb[1].mxu0  ;;  %v2164_v29 = vpop.f32.mrb[1].mxu1 }
  0xf6   : > { %v2166_v30 = vpop.f32.mrb[2].mxu0  ;;  %v2168_v31 = vpop.f32.mrb[2].mxu1  ;;  %v694_v32 = vmax.f32 %v2158_v26, %v2162_v28  ;;  %v742_v33 = vmax.f32 %v2160_v27, %v2164_v29 }
  0xf7   : > { %v2174_v34 = vpop.f32.mrb[3].mxu0  ;;  %v2176_v35 = vpop.f32.mrb[3].mxu1 }
  0xf8   : > { %695 = vmax.xlane.f32.xlu0 %v694_v32  ;;  %v745_v36 = vmax.f32 %v2168_v31, %v2176_v35  ;;  %v697_v37 = vmax.f32 %v2166_v30, %v2174_v34 }
  0xfa   : > { %746 = vmax.xlane.f32.xlu1 %v745_v36 }
  0xfc   : > { %743 = vmax.xlane.f32.xlu0 %v742_v33  ;;  %v2182_v38 = vpop.f32.mrb[4].mxu0  ;;  %v2184_v39 = vpop.f32.mrb[4].mxu1 }
  0xfd   : > { %v2186_v40 = vpop.f32.mrb[5].mxu0  ;;  %v2188_v41 = vpop.f32.mrb[5].mxu1 }
  0xfe   : > { %v2190_v42 = vpop.f32.mrb[6].mxu0  ;;  %v700_v43 = vmax.f32 %v2182_v38, %v2186_v40  ;;  %v2194_v44 = vpop.f32.mrb[6].mxu1  ;;  %v748_v45 = vmax.f32 %v2184_v39, %v2188_v41 }
  0xff   : > { %v2198_v46 = vpop.f32.mrb[7].mxu0  ;;  %v2200_v47 = vpop.f32.mrb[7].mxu1 }
 0x100   : > { %698 = vmax.xlane.f32.xlu0 %v697_v37  ;;  %701 = vmax.xlane.f32.xlu1 %v700_v43  ;;  %v703_v48 = vmax.f32 %v2190_v42, %v2198_v46  ;;  %v751_v49 = vmax.f32 %v2194_v44, %v2200_v47 }
 0x104   : > { %749 = vmax.xlane.f32.xlu0 %v748_v45  ;;  %704 = vmax.xlane.f32.xlu1 %v703_v48  ;;  %v2206_v50 = vpop.f32.mrb[8].mxu0  ;;  %v2208_v51 = vpop.f32.mrb[8].mxu1 }
 0x105   : > { %v2210_v52 = vpop.f32.mrb[9].mxu0  ;;  %v2212_v53 = vpop.f32.mrb[9].mxu1 }
 0x106   : > { %v706_v54 = vmax.f32 %v2206_v50, %v2210_v52  ;;  %v2216_v55 = vpop.f32.mrb[10].mxu0  ;;  %v2218_v56 = vpop.f32.mrb[10].mxu1  ;;  %v754_v57 = vmax.f32 %v2208_v51, %v2212_v53 }
 0x107   : > { %v2222_v58 = vpop.f32.mrb[11].mxu0  ;;  %v2224_v59 = vpop.f32.mrb[11].mxu1 }
 0x108   : > { %752 = vmax.xlane.f32.xlu1 %v751_v49  ;;  %707 = vmax.xlane.f32.xlu0 %v706_v54  ;;  %v709_v60 = vmax.f32 %v2216_v55, %v2222_v58  ;;  %v757_v61 = vmax.f32 %v2218_v56, %v2224_v59 }
 0x10c   : > { %755 = vmax.xlane.f32.xlu0 %v754_v57  ;;  %710 = vmax.xlane.f32.xlu1 %v709_v60  ;;  %v2230_v62 = vpop.f32.mrb[12].mxu0  ;;  %v2232_v63 = vpop.f32.mrb[12].mxu1 }
 0x10d   : > { %v2234_v0 = vpop.f32.mrb[13].mxu0  ;;  %v2236_v1 = vpop.f32.mrb[13].mxu1 }
 0x10e   : > { %v712_v2 = vmax.f32 %v2230_v62, %v2234_v0  ;;  %v2240_v3 = vpop.f32.mrb[14].mxu0  ;;  %v2242_v4 = vpop.f32.mrb[14].mxu1  ;;  %v760_v5 = vmax.f32 %v2232_v63, %v2236_v1 }
 0x10f   : > { %v2246_v6 = vpop.f32.mrb[15].mxu0  ;;  %v2248_v7 = vpop.f32.mrb[15].mxu1 }
 0x110   : > { %758 = vmax.xlane.f32.xlu1 %v757_v61  ;;  %713 = vmax.xlane.f32.xlu0 %v712_v2  ;;  %v715_v8 = vmax.f32 %v2240_v3, %v2246_v6  ;;  %v763_v9 = vmax.f32 %v2242_v4, %v2248_v7 }
 0x114   : > { %761 = vmax.xlane.f32.xlu0 %v760_v5  ;;  %716 = vmax.xlane.f32.xlu1 %v715_v8  ;;  %v2254_v10 = vpop.f32.mrb[16].mxu0  ;;  %v2256_v11 = vpop.f32.mrb[16].mxu1 }
 0x115   : > { %v2258_v12 = vpop.f32.mrb[17].mxu0  ;;  %v2260_v13 = vpop.f32.mrb[17].mxu1 }
 0x116   : > { %v718_v14 = vmax.f32 %v2254_v10, %v2258_v12  ;;  %v2264_v15 = vpop.f32.mrb[18].mxu0  ;;  %v2266_v16 = vpop.f32.mrb[18].mxu1  ;;  %v766_v17 = vmax.f32 %v2256_v11, %v2260_v13 }
 0x117   : > { %v2270_v18 = vpop.f32.mrb[19].mxu0  ;;  %v2272_v19 = vpop.f32.mrb[19].mxu1 }
 0x118   : > { %764 = vmax.xlane.f32.xlu1 %v763_v9  ;;  %719 = vmax.xlane.f32.xlu0 %v718_v14  ;;  %v721_v20 = vmax.f32 %v2264_v15, %v2270_v18  ;;  %v769_v21 = vmax.f32 %v2266_v16, %v2272_v19 }
 0x11c   : > { %767 = vmax.xlane.f32.xlu0 %v766_v17  ;;  %722 = vmax.xlane.f32.xlu1 %v721_v20  ;;  %v2278_v22 = vpop.f32.mrb[20].mxu0  ;;  %v2280_v23 = vpop.f32.mrb[20].mxu1 }
 0x11d   : > { %v2282_v24 = vpop.f32.mrb[21].mxu0  ;;  %v2284_v25 = vpop.f32.mrb[21].mxu1 }
 0x11e   : > { %v724_v32 = vmax.f32 %v2278_v22, %v2282_v24  ;;  %v2288_v33 = vpop.f32.mrb[22].mxu0  ;;  %v2290_v36 = vpop.f32.mrb[22].mxu1  ;;  %v772_v37 = vmax.f32 %v2280_v23, %v2284_v25 }
 0x11f   : > { %v2294_v43 = vpop.f32.mrb[23].mxu0  ;;  %v2296_v45 = vpop.f32.mrb[23].mxu1 }
 0x120   : > { %770 = vmax.xlane.f32.xlu1 %v769_v21  ;;  %725 = vmax.xlane.f32.xlu0 %v724_v32  ;;  %v727_v48 = vmax.f32 %v2288_v33, %v2294_v43  ;;  %v775_v49 = vmax.f32 %v2290_v36, %v2296_v45 }
 0x124   : > { %773 = vmax.xlane.f32.xlu0 %v772_v37  ;;  %728 = vmax.xlane.f32.xlu1 %v727_v48  ;;  %v2302_v54 = vpop.f32.mrb[24].mxu0  ;;  %v2304_v57 = vpop.f32.mrb[24].mxu1 }
 0x125   : > { %3810 = vst [vmem:[#allocation3_spill] sm:$0xff] %v2304_v57  ;;  %v2306_v60 = vpop.f32.mrb[25].mxu0  ;;  %v2308_v61 = vpop.f32.mrb[25].mxu1 }
 0x126   : > { %3811 = vst [vmem:[#allocation4_spill] sm:$0xff] %v2308_v61  ;;  %v730_v2 = vmax.f32 %v2302_v54, %v2306_v60  ;;  %v2312_v5 = vpop.f32.mrb[26].mxu0  ;;  %v2314_v8 = vpop.f32.mrb[26].mxu1  ;;  %v778_v9 = vmax.f32 %v2304_v57, %v2308_v61 }
 0x127   : > { %3812 = vst [vmem:[#allocation5_spill] sm:$0xff] %v2312_v5  ;;  %3813 = vst [vmem:[#allocation6_spill] sm:$0xff] %v2314_v8  ;;  %v2318_v14 = vpop.f32.mrb[27].mxu0  ;;  %v2320_v17 = vpop.f32.mrb[27].mxu1 }
 0x128   : > { %3814 = vst [vmem:[#allocation7_spill] sm:$0xff] %v2318_v14  ;;  %3815 = vst [vmem:[#allocation8_spill] sm:$0xff] %v2320_v17  ;;  %776 = vmax.xlane.f32.xlu1 %v775_v49  ;;  %731 = vmax.xlane.f32.xlu0 %v730_v2  ;;  %v733_v20 = vmax.f32 %v2312_v5, %v2318_v14  ;;  %v781_v21 = vmax.f32 %v2314_v8, %v2320_v17  ;;  %v2352_v5 = vld [vmem:[#allocation2] sm:$0xff] }
 0x129   : > { %3820 = vst [vmem:[#allocation13_spill] sm:$0xff] %v2352_v5 }
 0x12c   : > { %779 = vmax.xlane.f32.xlu0 %v778_v9  ;;  %734 = vmax.xlane.f32.xlu1 %v733_v20  ;;  %v2326_v32 = vpop.f32.mrb[28].mxu0  ;;  %v2328_v37 = vpop.f32.mrb[28].mxu1 }
 0x12d   : > { %3816 = vst [vmem:[#allocation9_spill] sm:$0xff] %v2326_v32  ;;  %3817 = vst [vmem:[#allocation10_spill] sm:$0xff] %v2328_v37  ;;  %v2330_v48 = vpop.f32.mrb[29].mxu0  ;;  %v2332_v61 = vpop.f32.mrb[29].mxu1 }
 0x12e   : > { %3818 = vst [vmem:[#allocation11_spill] sm:$0xff] %v2330_v48  ;;  %3819 = vst [vmem:[#allocation12_spill] sm:$0xff] %v2332_v61  ;;  %v736_v49 = vmax.f32 %v2326_v32, %v2330_v48  ;;  %v2336_v2 = vpop.f32.mrb[30].mxu0  ;;  %v2338_v57 = vpop.f32.mrb[30].mxu1  ;;  %v784_v17 = vmax.f32 %v2328_v37, %v2332_v61  ;;  %v688_v48 = vlaneseq }
 0x12f   : > { %v2342_v9 = vpop.f32.mrb[31].mxu0  ;;  %v2344_v20 = vpop.f32.mrb[31].mxu1 }
 0x130   : > { %782 = vmax.xlane.f32.xlu1 %v781_v21  ;;  %737 = vmax.xlane.f32.xlu0 %v736_v49  ;;  %v739_v8 = vmax.f32 %v2336_v2, %v2342_v9  ;;  %v787_v14 = vmax.f32 %v2338_v57, %v2344_v20  ;;  %v2350_v32 = vand.u32 127, %v688_v48  ;;  %v2359_v21 = vld [vmem:[#allocation2 + $0x88] sm:$0xff] }
 0x131   : > { %3822 = vst [vmem:[#allocation15_spill] sm:$0xff] %v2359_v21 }
 0x132   : > { %v2355_v61 = vadd.s32 128, %v2350_v32 }
 0x134   : > { %785 = vmax.xlane.f32.xlu0 %v784_v17  ;;  %740 = vmax.xlane.f32.xlu1 %v739_v8  ;;  %v2374_v17 = vld [vmem:[#allocation2 + $0x80] sm:$0xff] }
 0x135   : > { %3824 = vst [vmem:[#allocation17_spill] sm:$0xff] %v2374_v17 }
 0x138   : > { %788 = vmax.xlane.f32.xlu1 %v787_v14 }
 0x185   : > { %v2357_v37 = vpop.xlane.xlu0 %695 }
 0x186   : > { %3821 = vst [vmem:[#allocation14_spill] sm:$0xff] %v2357_v37  ;;  %vm790_vm3 = vcmp.ge.f32.partialorder %v2158_v26, %v2357_v37  ;;  %vm791_vm4 = vcmp.ge.f32.partialorder %v2162_v28, %v2357_v37  ;;  %vm3799_vm5 = vcmp.gt.f32.partialorder %v2357_v37, %v2352_v5 }
 0x187   : > { %v1623_v8 = vsel %vm3799_vm5, %v2357_v37, %v2352_v5  ;;  %v2372_v14 = vpop.xlane.xlu1 %746  ;;  %v854_v48 = vsel %vm790_vm3, %v2350_v32, 1073741824  ;;  %v855_v26 = vsel %vm791_vm4, %v2355_v61, 1073741824 }
 0x188   : > { %3823 = vst [vmem:[#allocation16_spill] sm:$0xff] %v2372_v14  ;;  %1655 = vst.msk [vmem:[#allocation2] sm:$0xff] %vm231_vm2, %v1623_v8  ;;  %vm824_vm6 = vcmp.ge.f32.partialorder %v2168_v31, %v2372_v14  ;;  %vm825_vm7 = vcmp.ge.f32.partialorder %v2176_v35, %v2372_v14  ;;  %vm3760_vm8 = vcmp.gt.f32.partialorder %v2372_v14, %v2359_v21 }
 0x189   : > { %vm918_vm9 = vcmp.lt.s32.totalorder %v854_v48, %v855_v26  ;;  %v1640_v28 = vsel %vm3760_vm8, %v2372_v14, %v2359_v21  ;;  %v2390_v49 = vpop.xlane.xlu0 %743  ;;  %v888_v8 = vsel %vm824_vm6, %v2350_v32, 1073741824  ;;  %v889_v31 = vsel %vm825_vm7, %v2355_v61, 1073741824 }
 0x18a   : > { %3825 = vst [vmem:[#allocation18_spill] sm:$0xff] %v2390_v49  ;;  %v2392_v5 = vsel %vm918_vm9, %v854_v48, %v855_v26  ;;  %1672 = vst.msk [vmem:[#allocation2 + $0x88] sm:$0xff] %vm231_vm2, %v1640_v28  ;;  %vm822_vm10 = vcmp.ge.f32.partialorder %v2160_v27, %v2390_v49  ;;  %vm823_vm11 = vcmp.ge.f32.partialorder %v2164_v29, %v2390_v49  ;;  %v2409_v26 = vld [vmem:[#allocation2 + $0x8] sm:$0xff]  ;;  %v2414_v29 = vld [vmem:[#allocation2 + $0x10] sm:$0xff] }
 0x18b   : > { %3826 = vst [vmem:[#allocation19_spill] sm:$0xff] %v2392_v5  ;;  %vm3789_vm12 = vcmp.gt.f32.partialorder %v2390_v49, %v2374_v17  ;;  %v921_v35 = vshra.s32 %v2392_v5, 16  ;;  %3827 = vst [vmem:[#allocation20_spill] sm:$0xff] %v2409_v26  ;;  %v886_v28 = vsel %vm822_vm10, %v2350_v32, 1073741824  ;;  %v887_v27 = vsel %vm823_vm11, %v2355_v61, 1073741824 }
 0x18c   : > { %v1639_v48 = vsel %vm3789_vm12, %v2390_v49, %v2374_v17  ;;  %vm1190_vm13 = vcmp.lt.s32.totalorder %v888_v8, %v889_v31  ;;  %3828 = vst [vmem:[#allocation21_spill] sm:$0xff] %v2414_v29  ;;  %vm1174_vm14 = vcmp.lt.s32.totalorder %v886_v28, %v887_v27 }
 0x18d   : > { %1671 = vst.msk [vmem:[#allocation2 + $0x80] sm:$0xff] %vm231_vm2, %v1639_v48  ;;  %v2416_v21 = vcvt.s32.f32 %v921_v35  ;;  %v2418_v14 = vsel %vm1190_vm13, %v888_v8, %v889_v31  ;;  %v2420_v37 = vpop.xlane.xlu0 %698  ;;  %v2422_v5 = vpop.xlane.xlu1 %701  ;;  %v2424_v17 = vsel %vm1174_vm14, %v886_v28, %v887_v27  ;;  %v2444_v31 = vld [vmem:[#allocation2 + $0x90] sm:$0xff]  ;;  %v2453_v48 = vld [vmem:[#allocation2 + $0x18] sm:$0xff] }
 0x18e   : > { %3829 = vst [vmem:[#allocation22_spill] sm:$0xff] %v2420_v37  ;;  %3830 = vst [vmem:[#allocation23_spill] sm:$0xff] %v2422_v5  ;;  %vm792_vm15 = vcmp.ge.f32.partialorder %v2166_v30, %v2420_v37  ;;  %vm793_vm0 = vcmp.ge.f32.partialorder %v2174_v34, %v2420_v37  ;;  %vm3784_vm1 = vcmp.gt.f32.partialorder %v2420_v37, %v2409_v26  ;;  %v1177_v35 = vshra.s32 %v2424_v17, 16  ;;  %v2490_v34 = vld [vmem:[#allocation2 + $0x98] sm:$0xff] }
 0x18f   : > { %vm794_vm3 = vcmp.ge.f32.partialorder %v2182_v38, %v2422_v5  ;;  %924 = vmin.xlane.f32.xlu0 %v2416_v21  ;;  %v1624_v8 = vsel %vm3784_vm1, %v2420_v37, %v2409_v26  ;;  %vm795_vm4 = vcmp.ge.f32.partialorder %v2186_v40, %v2422_v5  ;;  %vm3786_vm6 = vcmp.gt.f32.partialorder %v2422_v5, %v2414_v29 }
 0x190   : > { %3831 = vst [vmem:[#allocation24_spill] sm:$0xff] %v2444_v31  ;;  %1656 = vst.msk [vmem:[#allocation2 + $0x8] sm:$0xff] %vm231_vm2, %v1624_v8  ;;  %v1625_v38 = vsel %vm3786_vm6, %v2422_v5, %v2414_v29  ;;  %v858_v28 = vsel %vm794_vm3, %v2350_v32, 1073741824  ;;  %v859_v40 = vsel %vm795_vm4, %v2355_v61, 1073741824  ;;  %v2462_v49 = vcvt.s32.f32 %v1177_v35 }
 0x191   : > { %3832 = vst [vmem:[#allocation25_spill] sm:$0xff] %v2453_v48  ;;  %1657 = vst.msk [vmem:[#allocation2 + $0x10] sm:$0xff] %vm231_vm2, %v1625_v38  ;;  %v2458_v27 = vpop.xlane.xlu0 %749  ;;  %v2460_v26 = vpop.xlane.xlu1 %704  ;;  %vm950_vm7 = vcmp.lt.s32.totalorder %v858_v28, %v859_v40  ;;  %v856_v8 = vsel %vm792_vm15, %v2350_v32, 1073741824  ;;  %v857_v29 = vsel %vm793_vm0, %v2355_v61, 1073741824 }
 0x192   : > { %3833 = vst [vmem:[#allocation26_spill] sm:$0xff] %v2458_v27  ;;  %3834 = vst [vmem:[#allocation27_spill] sm:$0xff] %v2460_v26  ;;  %vm826_vm9 = vcmp.ge.f32.partialorder %v2184_v39, %v2458_v27  ;;  %vm827_vm10 = vcmp.ge.f32.partialorder %v2188_v41, %v2458_v27  ;;  %vm3777_vm11 = vcmp.gt.f32.partialorder %v2458_v27, %v2444_v31 }
 0x193   : > { %3835 = vst [vmem:[#allocation28_spill] sm:$0xff] %v2462_v49  ;;  %vm796_vm13 = vcmp.ge.f32.partialorder %v2190_v42, %v2460_v26  ;;  %v1641_v30 = vsel %vm3777_vm11, %v2458_v27, %v2444_v31  ;;  %vm797_vm14 = vcmp.ge.f32.partialorder %v2198_v46, %v2460_v26  ;;  %vm3753_vm15 = vcmp.gt.f32.partialorder %v2460_v26, %v2453_v48  ;;  %v2500_v31 = vld [vmem:[#allocation2 + $0x20] sm:$0xff] }
 0x194   : > { %1180 = vmin.xlane.f32.xlu0 %v2462_v49  ;;  %3836 = vst [vmem:[#allocation29_spill] sm:$0xff] %v2490_v34  ;;  %v2492_v35 = vsel %vm950_vm7, %v858_v28, %v859_v40  ;;  %1673 = vst.msk [vmem:[#allocation2 + $0x90] sm:$0xff] %vm231_vm2, %v1641_v30  ;;  %v1626_v38 = vsel %vm3753_vm15, %v2460_v26, %v2453_v48  ;;  %vm934_vm0 = vcmp.lt.s32.totalorder %v856_v8, %v857_v29  ;;  %v2542_v42 = vld [vmem:[#allocation2 + $0xa0] sm:$0xff] }
 0x195   : > { %3837 = vst [vmem:[#allocation30_spill] sm:$0xff] %v2500_v31  ;;  %v953_v37 = vshra.s32 %v2492_v35, 16  ;;  %1658 = vst.msk [vmem:[#allocation2 + $0x18] sm:$0xff] %vm231_vm2, %v1626_v38  ;;  %v2504_v5 = vpop.xlane.xlu1 %752  ;;  %v2506_v49 = vpop.xlane.xlu0 %707  ;;  %v2508_v28 = vsel %vm934_vm0, %v856_v8, %v857_v29  ;;  %v890_v40 = vsel %vm826_vm9, %v2350_v32, 1073741824  ;;  %v891_v30 = vsel %vm827_vm10, %v2355_v61, 1073741824 }
 0x196   : > { %3838 = vst [vmem:[#allocation31_spill] sm:$0xff] %v2504_v5  ;;  %3839 = vst [vmem:[#allocation32_spill] sm:$0xff] %v2506_v49  ;;  %v1193_v48 = vshra.s32 %v2418_v14, 16  ;;  %vm3724_vm3 = vcmp.gt.f32.partialorder %v2504_v5, %v2490_v34  ;;  %vm798_vm4 = vcmp.ge.f32.partialorder %v2206_v50, %v2506_v49  ;;  %v860_v29 = vsel %vm796_vm13, %v2350_v32, 1073741824 }
 0x197   : > { %v861_v39 = vsel %vm797_vm14, %v2355_v61, 1073741824  ;;  %v1642_v41 = vsel %vm3724_vm3, %v2504_v5, %v2490_v34  ;;  %vm799_vm7 = vcmp.ge.f32.partialorder %v2210_v52, %v2506_v49  ;;  %vm3759_vm9 = vcmp.gt.f32.partialorder %v2506_v49, %v2500_v31  ;;  %3840 = vst [vmem:[#allocation33_spill] sm:$0xff] %v2542_v42  ;;  %v2551_v34 = vld [vmem:[#allocation2 + $0x28] sm:$0xff] }
 0x198   : > { %v2540_v8 = vcvt.s32.f32 %v953_v37  ;;  %1674 = vst.msk [vmem:[#allocation2 + $0x98] sm:$0xff] %vm231_vm2, %v1642_v41  ;;  %v1627_v46 = vsel %vm3759_vm9, %v2506_v49, %v2500_v31  ;;  %v937_v38 = vshra.s32 %v2508_v28, 16  ;;  %3841 = vst [vmem:[#allocation34_spill] sm:$0xff] %v2551_v34  ;;  %vm1206_vm10 = vcmp.lt.s32.totalorder %v890_v40, %v891_v30 }
 0x199   : > { %1659 = vst.msk [vmem:[#allocation2 + $0x20] sm:$0xff] %vm231_vm2, %v1627_v46  ;;  %v2555_v52 = vpop.xlane.xlu0 %755  ;;  %v2557_v37 = vpop.xlane.xlu1 %710  ;;  %v2559_v41 = vsel %vm1206_vm10, %v890_v40, %v891_v30  ;;  %v862_v26 = vsel %vm798_vm4, %v2350_v32, 1073741824  ;;  %v863_v31 = vsel %vm799_vm7, %v2355_v61, 1073741824  ;;  %vm966_vm13 = vcmp.lt.s32.totalorder %v860_v29, %v861_v39  ;;  %v2583_v30 = vld [vmem:[#allocation2 + $0xa8] sm:$0xff] }
 0x19a   : > { %956 = vmin.xlane.f32.xlu0 %v2540_v8  ;;  %3842 = vst [vmem:[#allocation35_spill] sm:$0xff] %v2555_v52  ;;  %3843 = vst [vmem:[#allocation36_spill] sm:$0xff] %v2557_v37  ;;  %v2566_v27 = vcvt.s32.f32 %v937_v38  ;;  %vm830_vm14 = vcmp.ge.f32.partialorder %v2208_v51, %v2555_v52  ;;  %vm831_vm0 = vcmp.ge.f32.partialorder %v2212_v53, %v2555_v52  ;;  %v2581_v40 = vcvt.s32.f32 %v1193_v48  ;;  %v2632_v53 = vld [vmem:[#allocation2 + $0xb0] sm:$0xff] }
 0x19b   : > { %vm3737_vm10 = vcmp.gt.f32.partialorder %v2555_v52, %v2542_v42  ;;  %vm3727_vm4 = vcmp.gt.f32.partialorder %v2557_v37, %v2551_v34  ;;  %3846 = vst [vmem:[#allocation39_spill] sm:$0xff] %v2583_v30  ;;  %v1209_v38 = vshra.s32 %v2559_v41, 16  ;;  %vm982_vm7 = vcmp.lt.s32.totalorder %v862_v26, %v863_v31  ;;  %3852 = vst [vmem:[#allocation45_spill] sm:$0xff] %v2632_v53 }
 0x19c   : > { %3844 = vst [vmem:[#allocation37_spill] sm:$0xff] %v2566_v27  ;;  %v1643_v50 = vsel %vm3737_vm10, %v2555_v52, %v2542_v42  ;;  %3845 = vst [vmem:[#allocation38_spill] sm:$0xff] %v2581_v40  ;;  %940 = vmin.xlane.f32.xlu1 %v2566_v27  ;;  %v1628_v46 = vsel %vm3727_vm4, %v2557_v37, %v2551_v34  ;;  %v2593_v42 = vld [vmem:[#allocation2 + $0x30] sm:$0xff]  ;;  %v2595_v49 = vsel %vm966_vm13, %v860_v29, %v861_v39 }
 0x19d   : > { %1675 = vst.msk [vmem:[#allocation2 + $0xa0] sm:$0xff] %vm231_vm2, %v1643_v50  ;;  %3847 = vst [vmem:[#allocation40_spill] sm:$0xff] %v2593_v42  ;;  %vm828_vm3 = vcmp.ge.f32.partialorder %v2194_v44, %v2504_v5  ;;  %v2600_v48 = vpop.xlane.xlu1 %758  ;;  %v2602_v50 = vpop.xlane.xlu0 %713  ;;  %v2604_v27 = vsel %vm982_vm7, %v862_v26, %v863_v31  ;;  %v894_v34 = vsel %vm830_vm14, %v2350_v32, 1073741824  ;;  %v895_v29 = vsel %vm831_vm0, %v2355_v61, 1073741824 }
 0x19e   : > { %3848 = vst [vmem:[#allocation41_spill] sm:$0xff] %v2595_v49  ;;  %1660 = vst.msk [vmem:[#allocation2 + $0x28] sm:$0xff] %vm231_vm2, %v1628_v46  ;;  %vm829_vm13 = vcmp.ge.f32.partialorder %v2200_v47, %v2504_v5  ;;  %v2616_v39 = vcvt.s32.f32 %v1209_v38  ;;  %vm3728_vm4 = vcmp.gt.f32.partialorder %v2600_v48, %v2583_v30  ;;  %v969_v26 = vshra.s32 %v2595_v49, 16  ;;  %v2643_v38 = vld [vmem:[#allocation2 + $0x38] sm:$0xff] }
 0x19f   : > { %3849 = vst [vmem:[#allocation42_spill] sm:$0xff] %v2600_v48  ;;  %3850 = vst [vmem:[#allocation43_spill] sm:$0xff] %v2602_v50  ;;  %v1644_v51 = vsel %vm3728_vm4, %v2600_v48, %v2583_v30  ;;  %vm802_vm14 = vcmp.ge.f32.partialorder %v2230_v62, %v2602_v50  ;;  %vm803_vm0 = vcmp.ge.f32.partialorder %v2234_v0, %v2602_v50  ;;  %v985_v46 = vshra.s32 %v2604_v27, 16 }
 0x1a0   : > { %3851 = vst [vmem:[#allocation44_spill] sm:$0xff] %v2616_v39  ;;  %vm3736_vm7 = vcmp.gt.f32.partialorder %v2602_v50, %v2593_v42  ;;  %1212 = vmin.xlane.f32.xlu0 %v2616_v39  ;;  %1196 = vmin.xlane.f32.xlu1 %v2581_v40  ;;  %1676 = vst.msk [vmem:[#allocation2 + $0xa8] sm:$0xff] %vm231_vm2, %v1644_v51  ;;  %vm1238_vm4 = vcmp.lt.s32.totalorder %v894_v34, %v895_v29  ;;  %v892_v30 = vsel %vm828_vm3, %v2350_v32, 1073741824 }
 0x1a1   : > { %v1629_v31 = vsel %vm3736_vm7, %v2602_v50, %v2593_v42  ;;  %3853 = vst [vmem:[#allocation46_spill] sm:$0xff] %v2643_v38  ;;  %v2650_v52 = vpop.xlane.xlu0 %761  ;;  %v2652_v51 = vpop.xlane.xlu1 %716  ;;  %v2654_v40 = vsel %vm1238_vm4, %v894_v34, %v895_v29  ;;  %v893_v42 = vsel %vm829_vm13, %v2355_v61, 1073741824  ;;  %v866_v39 = vsel %vm802_vm14, %v2350_v32, 1073741824  ;;  %v2694_v34 = vld [vmem:[#allocation2 + $0xb8] sm:$0xff]  ;;  %v2696_v29 = vld [vmem:[#allocation2 + $0x40] sm:$0xff] }
 0x1a2   : > { %1661 = vst.msk [vmem:[#allocation2 + $0x30] sm:$0xff] %vm231_vm2, %v1629_v31  ;;  %3854 = vst [vmem:[#allocation47_spill] sm:$0xff] %v2650_v52  ;;  %v867_v44 = vsel %vm803_vm0, %v2355_v61, 1073741824  ;;  %v2668_v31 = vcvt.s32.f32 %v985_v46  ;;  %v2670_v49 = vcvt.s32.f32 %v969_v26  ;;  %vm3735_vm3 = vcmp.gt.f32.partialorder %v2650_v52, %v2632_v53 }
 0x1a3   : > { %3855 = vst [vmem:[#allocation48_spill] sm:$0xff] %v2652_v51  ;;  %vm800_vm4 = vcmp.ge.f32.partialorder %v2216_v55, %v2557_v37  ;;  %vm801_vm13 = vcmp.ge.f32.partialorder %v2222_v58, %v2557_v37  ;;  %v1645_v47 = vsel %vm3735_vm3, %v2650_v52, %v2632_v53  ;;  %vm3742_vm14 = vcmp.gt.f32.partialorder %v2652_v51, %v2643_v38 }
 0x1a4   : > { %988 = vmin.xlane.f32.xlu0 %v2668_v31  ;;  %972 = vmin.xlane.f32.xlu1 %v2670_v49  ;;  %1677 = vst.msk [vmem:[#allocation2 + $0xb0] sm:$0xff] %vm231_vm2, %v1645_v47  ;;  %v1630_v62 = vsel %vm3742_vm14, %v2652_v51, %v2643_v38  ;;  %v1241_v0 = vshra.s32 %v2654_v40, 16  ;;  %vm1222_vm0 = vcmp.lt.s32.totalorder %v892_v30, %v893_v42  ;;  %3856 = vst [vmem:[#allocation49_spill] sm:$0xff] %v2694_v34 }
 0x1a5   : > { %3857 = vst [vmem:[#allocation50_spill] sm:$0xff] %v2696_v29  ;;  %vm1014_vm3 = vcmp.lt.s32.totalorder %v866_v39, %v867_v44  ;;  %vm834_vm7 = vcmp.ge.f32.partialorder %v2232_v63, %v2650_v52  ;;  %vm835_vm10 = vcmp.ge.f32.partialorder %v2236_v1, %v2650_v52  ;;  %1662 = vst.msk [vmem:[#allocation2 + $0x38] sm:$0xff] %vm231_vm2, %v1630_v62  ;;  %v2705_v46 = vpop.xlane.xlu1 %764  ;;  %v2707_v47 = vpop.xlane.xlu0 %719  ;;  %v864_v5 = vsel %vm800_vm4, %v2350_v32, 1073741824  ;;  %v2750_v62 = vld [vmem:[#allocation2 + $0x48] sm:$0xff] }
 0x1a6   : > { %v2703_v26 = vsel %vm1222_vm0, %v892_v30, %v893_v42  ;;  %3858 = vst [vmem:[#allocation51_spill] sm:$0xff] %v2705_v46  ;;  %3859 = vst [vmem:[#allocation52_spill] sm:$0xff] %v2707_v47  ;;  %v2709_v38 = vsel %vm1014_vm3, %v866_v39, %v867_v44  ;;  %v2711_v53 = vcvt.s32.f32 %v1241_v0  ;;  %v865_v42 = vsel %vm801_vm13, %v2355_v61, 1073741824  ;;  %v2742_v44 = vld [vmem:[#allocation2 + $0xc0] sm:$0xff] }
 0x1a7   : > { %v1225_v50 = vshra.s32 %v2703_v26, 16  ;;  %vm832_vm0 = vcmp.ge.f32.partialorder %v2218_v56, %v2600_v48  ;;  %vm3746_vm3 = vcmp.gt.f32.partialorder %v2705_v46, %v2694_v34  ;;  %vm3751_vm14 = vcmp.gt.f32.partialorder %v2707_v47, %v2696_v29  ;;  %3860 = vst [vmem:[#allocation53_spill] sm:$0xff] %v2742_v44  ;;  %3862 = vst [vmem:[#allocation55_spill] sm:$0xff] %v2750_v62 }
 0x1a8   : > { %1244 = vmin.xlane.f32.xlu0 %v2711_v53  ;;  %v1646_v55 = vsel %vm3746_vm3, %v2705_v46, %v2694_v34  ;;  %v1631_v58 = vsel %vm3751_vm14, %v2707_v47, %v2696_v29  ;;  %v1017_v39 = vshra.s32 %v2709_v38, 16  ;;  %vm833_vm4 = vcmp.ge.f32.partialorder %v2224_v59, %v2600_v48 }
 0x1a9   : > { %v2729_v30 = vcvt.s32.f32 %v1225_v50  ;;  %1678 = vst.msk [vmem:[#allocation2 + $0xb8] sm:$0xff] %vm231_vm2, %v1646_v55  ;;  %1663 = vst.msk [vmem:[#allocation2 + $0x40] sm:$0xff] %vm231_vm2, %v1631_v58  ;;  %vm998_vm13 = vcmp.lt.s32.totalorder %v864_v5, %v865_v42  ;;  %v2748_v50 = vpop.xlane.xlu0 %767  ;;  %v2752_v0 = vpop.xlane.xlu1 %722  ;;  %v898_v34 = vsel %vm834_vm7, %v2350_v32, 1073741824  ;;  %v899_v29 = vsel %vm835_vm10, %v2355_v61, 1073741824 }
 0x1aa   : > { %3861 = vst [vmem:[#allocation54_spill] sm:$0xff] %v2748_v50  ;;  %3863 = vst [vmem:[#allocation56_spill] sm:$0xff] %v2752_v0  ;;  %v2763_v55 = vcvt.s32.f32 %v1017_v39  ;;  %v2765_v58 = vsel %vm998_vm13, %v864_v5, %v865_v42  ;;  %v896_v37 = vsel %vm832_vm0, %v2350_v32, 1073741824  ;;  %vm804_vm3 = vcmp.ge.f32.partialorder %v2240_v3, %v2652_v51  ;;  %v2790_v5 = vld [vmem:[#allocation2 + $0xc8] sm:$0xff] }
 0x1ab   : > { %1228 = vmin.xlane.f32.xlu1 %v2729_v30  ;;  %vm806_vm7 = vcmp.ge.f32.partialorder %v2254_v10, %v2707_v47  ;;  %v1001_v63 = vshra.s32 %v2765_v58, 16  ;;  %vm3748_vm10 = vcmp.gt.f32.partialorder %v2748_v50, %v2742_v44  ;;  %vm3752_vm0 = vcmp.gt.f32.partialorder %v2752_v0, %v2750_v62  ;;  %3865 = vst [vmem:[#allocation58_spill] sm:$0xff] %v2790_v5 }
 0x1ac   : > { %3864 = vst [vmem:[#allocation57_spill] sm:$0xff] %v2763_v55  ;;  %1020 = vmin.xlane.f32.xlu0 %v2763_v55  ;;  %v1647_v56 = vsel %vm3748_vm10, %v2748_v50, %v2742_v44  ;;  %vm1270_vm13 = vcmp.lt.s32.totalorder %v898_v34, %v899_v29  ;;  %v897_v1 = vsel %vm833_vm4, %v2355_v61, 1073741824  ;;  %v1632_v39 = vsel %vm3752_vm0, %v2752_v0, %v2750_v62  ;;  %v2804_v55 = vld [vmem:[#allocation2 + $0x50] sm:$0xff] }
 0x1ad   : > { %v2792_v42 = vcvt.s32.f32 %v1001_v63  ;;  %1679 = vst.msk [vmem:[#allocation2 + $0xc0] sm:$0xff] %vm231_vm2, %v1647_v56  ;;  %v2800_v44 = vsel %vm1270_vm13, %v898_v34, %v899_v29  ;;  %vm1254_vm10 = vcmp.lt.s32.totalorder %v896_v37, %v897_v1  ;;  %v2802_v52 = vpop.xlane.xlu1 %770  ;;  %3867 = vst [vmem:[#allocation60_spill] sm:$0xff] %v2804_v55  ;;  %v2806_v59 = vpop.xlane.xlu0 %725  ;;  %vm805_vm4 = vcmp.ge.f32.partialorder %v2246_v6, %v2652_v51 }
 0x1ae   : > { %3866 = vst [vmem:[#allocation59_spill] sm:$0xff] %v2802_v52  ;;  %3868 = vst [vmem:[#allocation61_spill] sm:$0xff] %v2806_v59  ;;  %vm807_vm14 = vcmp.ge.f32.partialorder %v2258_v12, %v2707_v47  ;;  %v1273_v63 = vshra.s32 %v2800_v44, 16  ;;  %v2814_v56 = vsel %vm1254_vm10, %v896_v37, %v897_v1  ;;  %vm836_vm13 = vcmp.ge.f32.partialorder %v2242_v4, %v2705_v46  ;;  %v2869_v12 = vld [vmem:[#allocation2 + $0x58] sm:$0xff]  ;;  %v2932_v47 = vld [vmem:[#allocation2 + $0x60] sm:$0xff] }
 0x1af   : > { %1664 = vst.msk [vmem:[#allocation2 + $0x48] sm:$0xff] %vm231_vm2, %v1632_v39  ;;  %vm837_vm0 = vcmp.ge.f32.partialorder %v2248_v7, %v2705_v46  ;;  %1004 = vmin.xlane.f32.xlu1 %v2792_v42  ;;  %v1257_v34 = vshra.s32 %v2814_v56, 16  ;;  %vm3757_vm15 = vcmp.gt.f32.partialorder %v2802_v52, %v2790_v5  ;;  %vm3758_vm10 = vcmp.gt.f32.partialorder %v2806_v59, %v2804_v55  ;;  %v2837_v39 = vld [vmem:[#allocation2 + $0xd0] sm:$0xff] }
 0x1b0   : > { %v2824_v29 = vcvt.s32.f32 %v1273_v63  ;;  %v1648_v37 = vsel %vm3757_vm15, %v2802_v52, %v2790_v5  ;;  %v870_v1 = vsel %vm806_vm7, %v2350_v32, 1073741824  ;;  %3869 = vst [vmem:[#allocation62_spill] sm:$0xff] %v2837_v39  ;;  %v1633_v63 = vsel %vm3758_vm10, %v2806_v59, %v2804_v55  ;;  %3872 = vst [vmem:[#allocation65_spill] sm:$0xff] %v2869_v12 }
 0x1b1   : > { %v2839_v62 = vcvt.s32.f32 %v1257_v34  ;;  %1680 = vst.msk [vmem:[#allocation2 + $0xc8] sm:$0xff] %vm231_vm2, %v1648_v37  ;;  %v871_v5 = vsel %vm807_vm14, %v2355_v61, 1073741824  ;;  %v868_v10 = vsel %vm804_vm3, %v2350_v32, 1073741824  ;;  %v2855_v34 = vpop.xlane.xlu0 %773  ;;  %v2857_v48 = vpop.xlane.xlu1 %728  ;;  %vm838_vm7 = vcmp.ge.f32.partialorder %v2256_v11, %v2748_v50  ;;  %1665 = vst.msk [vmem:[#allocation2 + $0x50] sm:$0xff] %vm231_vm2, %v1633_v63 }
 0x1b2   : > { %3870 = vst [vmem:[#allocation63_spill] sm:$0xff] %v2855_v34  ;;  %3871 = vst [vmem:[#allocation64_spill] sm:$0xff] %v2857_v48  ;;  %vm839_vm15 = vcmp.ge.f32.partialorder %v2260_v13, %v2748_v50  ;;  %1276 = vmin.xlane.f32.xlu0 %v2824_v29  ;;  %vm1046_vm14 = vcmp.lt.s32.totalorder %v870_v1, %v871_v5  ;;  %v869_v3 = vsel %vm805_vm4, %v2355_v61, 1073741824  ;;  %v900_v13 = vsel %vm836_vm13, %v2350_v32, 1073741824 }
 0x1b3   : > { %vm808_vm3 = vcmp.ge.f32.partialorder %v2264_v15, %v2752_v0  ;;  %1260 = vmin.xlane.f32.xlu1 %v2839_v62  ;;  %v2874_v37 = vsel %vm1046_vm14, %v870_v1, %v871_v5  ;;  %vm1030_vm10 = vcmp.lt.s32.totalorder %v868_v10, %v869_v3  ;;  %vm3768_vm9 = vcmp.gt.f32.partialorder %v2855_v34, %v2837_v39 }
 0x1b4   : > { %vm809_vm8 = vcmp.ge.f32.partialorder %v2270_v18, %v2752_v0  ;;  %v1049_v63 = vshra.s32 %v2874_v37, 16  ;;  %v2881_v6 = vsel %vm1030_vm10, %v868_v10, %v869_v3  ;;  %v1649_v55 = vsel %vm3768_vm9, %v2855_v34, %v2837_v39  ;;  %v2900_v3 = vld [vmem:[#allocation2 + $0xd8] sm:$0xff]  ;;  %3875 = vst [vmem:[#allocation68_spill] sm:$0xff] %v2932_v47 }
 0x1b5   : > { %v1033_v5 = vshra.s32 %v2881_v6, 16  ;;  %1681 = vst.msk [vmem:[#allocation2 + $0xd0] sm:$0xff] %vm231_vm2, %v1649_v55  ;;  %vm3767_vm4 = vcmp.gt.f32.partialorder %v2857_v48, %v2869_v12  ;;  %v902_v1 = vsel %vm838_vm7, %v2350_v32, 1073741824  ;;  %v903_v10 = vsel %vm839_vm15, %v2355_v61, 1073741824  ;;  %3873 = vst [vmem:[#allocation66_spill] sm:$0xff] %v2900_v3  ;;  %v2902_v39 = vpop.xlane.xlu1 %776  ;;  %v2904_v51 = vpop.xlane.xlu0 %731 }
 0x1b6   : > { %3874 = vst [vmem:[#allocation67_spill] sm:$0xff] %v2904_v51  ;;  %vm840_vm10 = vcmp.ge.f32.partialorder %v2266_v16, %v2802_v52  ;;  %vm841_vm14 = vcmp.ge.f32.partialorder %v2272_v19, %v2802_v52  ;;  %v2910_v55 = vcvt.s32.f32 %v1049_v63  ;;  %v1634_v11 = vsel %vm3767_vm4, %v2857_v48, %v2869_v12  ;;  %v3890_v19 = vld [vmem:[#allocation5_spill] sm:$0xff] }
 0x1b7   : > { %vm1302_vm15 = vcmp.lt.s32.totalorder %v902_v1, %v903_v10  ;;  %vm810_vm7 = vcmp.ge.f32.partialorder %v2278_v22, %v2806_v59  ;;  %v2923_v50 = vcvt.s32.f32 %v1033_v5  ;;  %1666 = vst.msk [vmem:[#allocation2 + $0x58] sm:$0xff] %vm231_vm2, %v1634_v11  ;;  %v901_v12 = vsel %vm837_vm0, %v2355_v61, 1073741824  ;;  %v3892_v52 = vld [vmem:[#allocation9_spill] sm:$0xff] }
 0x1b8   : > { %v2926_v63 = vsel %vm1302_vm15, %v902_v1, %v903_v10  ;;  %vm811_vm4 = vcmp.ge.f32.partialorder %v2282_v24, %v2806_v59  ;;  %1052 = vmin.xlane.f32.xlu0 %v2910_v55  ;;  %vm1286_vm13 = vcmp.lt.s32.totalorder %v900_v13, %v901_v12  ;;  %vm3772_vm9 = vcmp.gt.f32.partialorder %v2902_v39, %v2900_v3  ;;  %v2991_v24 = vld [vmem:[#allocation2 + $0x68] sm:$0xff] }
 0x1b9   : > { %v1305_v4 = vshra.s32 %v2926_v63, 16  ;;  %1036 = vmin.xlane.f32.xlu1 %v2923_v50  ;;  %vm842_vm15 = vcmp.ge.f32.partialorder %v2280_v23, %v2855_v34  ;;  %vm843_vm0 = vcmp.ge.f32.partialorder %v2284_v25, %v2855_v34  ;;  %v2945_v7 = vsel %vm1286_vm13, %v900_v13, %v901_v12  ;;  %v2952_v1 = vpop.xlane.xlu0 %779  ;;  %v2954_v10 = vpop.xlane.xlu1 %734  ;;  %v2966_v13 = vld [vmem:[#allocation2 + $0xe0] sm:$0xff]  ;;  %3878 = vst [vmem:[#allocation71_spill] sm:$0xff] %v2991_v24 }
 0x1ba   : > { %v1650_v5 = vsel %vm3772_vm9, %v2902_v39, %v2900_v3  ;;  %v1289_v46 = vshra.s32 %v2945_v7, 16  ;;  %vm3774_vm13 = vcmp.gt.f32.partialorder %v2904_v51, %v2932_v47  ;;  %v874_v12 = vsel %vm810_vm7, %v2350_v32, 1073741824  ;;  %3876 = vst [vmem:[#allocation69_spill] sm:$0xff] %v2966_v13  ;;  %v3885_v25 = vld [vmem:[#allocation3_spill] sm:$0xff] }
 0x1bb   : > { %v2956_v11 = vcvt.s32.f32 %v1305_v4  ;;  %1682 = vst.msk [vmem:[#allocation2 + $0xd8] sm:$0xff] %vm231_vm2, %v1650_v5  ;;  %v1635_v4 = vsel %vm3774_vm13, %v2904_v51, %v2932_v47  ;;  %v875_v5 = vsel %vm811_vm4, %v2355_v61, 1073741824  ;;  %v872_v3 = vsel %vm808_vm3, %v2350_v32, 1073741824 }
 0x1bc   : > { %v873_v22 = vsel %vm809_vm8, %v2355_v61, 1073741824  ;;  %vm812_vm7 = vcmp.ge.f32.partialorder %v2288_v33, %v2857_v48  ;;  %v2988_v47 = vcvt.s32.f32 %v1289_v46  ;;  %1667 = vst.msk [vmem:[#allocation2 + $0x60] sm:$0xff] %vm231_vm2, %v1635_v4  ;;  %vm1078_vm4 = vcmp.lt.s32.totalorder %v874_v12, %v875_v5  ;;  %v3900_v33 = vld [vmem:[#allocation10_spill] sm:$0xff] }
 0x1bd   : > { %1308 = vmin.xlane.f32.xlu0 %v2956_v11  ;;  %vm1062_vm9 = vcmp.lt.s32.totalorder %v872_v3, %v873_v22  ;;  %vm813_vm3 = vcmp.ge.f32.partialorder %v2294_v43, %v2857_v48  ;;  %v2995_v15 = vsel %vm1078_vm4, %v874_v12, %v875_v5  ;;  %vm3776_vm8 = vcmp.gt.f32.partialorder %v2952_v1, %v2966_v13  ;;  %v3001_v0 = vpop.xlane.xlu1 %782  ;;  %v3003_v46 = vpop.xlane.xlu0 %737 }
 0x1be   : > { %3877 = vst [vmem:[#allocation70_spill] sm:$0xff] %v2988_v47  ;;  %3879 = vst [vmem:[#allocation72_spill] sm:$0xff] %v2995_v15  ;;  %v2997_v18 = vsel %vm1062_vm9, %v872_v3, %v873_v22  ;;  %1292 = vmin.xlane.f32.xlu1 %v2988_v47  ;;  %vm814_vm13 = vcmp.ge.f32.partialorder %v2302_v54, %v2904_v51  ;;  %v1081_v4 = vshra.s32 %v2995_v15, 16  ;;  %v906_v12 = vsel %vm842_vm15, %v2350_v32, 1073741824  ;;  %v3028_v22 = vld [vmem:[#allocation2 + $0xe8] sm:$0xff]  ;;  %v3056_v47 = vld [vmem:[#allocation2 + $0x70] sm:$0xff] }
 0x1bf   : > { %3880 = vst [vmem:[#allocation73_spill] sm:$0xff] %v2997_v18  ;;  %3881 = vst [vmem:[#allocation74_spill] sm:$0xff] %v3001_v0  ;;  %v1065_v59 = vshra.s32 %v2997_v18, 16  ;;  %v1651_v3 = vsel %vm3776_vm8, %v2952_v1, %v2966_v13  ;;  %vm815_vm9 = vcmp.ge.f32.partialorder %v2306_v60, %v2904_v51  ;;  %vm3781_vm4 = vcmp.gt.f32.partialorder %v2954_v10, %v2991_v24  ;;  %v3899_v60 = vld [vmem:[#allocation8_spill] sm:$0xff]  ;;  %v3123_v51 = vld [vmem:[#allocation2 + $0x78] sm:$0xff] }
 0x1c0   : > { %1683 = vst.msk [vmem:[#allocation2 + $0xe0] sm:$0xff] %vm231_vm2, %v1651_v3  ;;  %v907_v5 = vsel %vm843_vm0, %v2355_v61, 1073741824  ;;  %3882 = vst [vmem:[#allocation75_spill] sm:$0xff] %v3028_v22  ;;  %vm844_vm8 = vcmp.ge.f32.partialorder %v2290_v36, %v2902_v39  ;;  %vm845_vm11 = vcmp.ge.f32.partialorder %v2296_v45, %v2902_v39  ;;  %v3034_v3 = vcvt.s32.f32 %v1081_v4 }
 0x1c1   : > { %v3036_v13 = vcvt.s32.f32 %v1065_v59  ;;  %v1636_v23 = vsel %vm3781_vm4, %v2954_v10, %v2991_v24  ;;  %vm1334_vm15 = vcmp.lt.s32.totalorder %v906_v12, %v907_v5  ;;  %vm846_vm0 = vcmp.ge.f32.partialorder %v3885_v25, %v2952_v1  ;;  %3887 = vst [vmem:[#allocation78_spill] sm:$0xff] %v3056_v47  ;;  %v3065_v16 = vpop.xlane.xlu1 %740 }
 0x1c2   : > { %3883 = vst [vmem:[#allocation76_spill] sm:$0xff] %v3034_v3  ;;  %1668 = vst.msk [vmem:[#allocation2 + $0x68] sm:$0xff] %vm231_vm2, %v1636_v23  ;;  %v3046_v34 = vsel %vm1334_vm15, %v906_v12, %v907_v5  ;;  %v904_v59 = vsel %vm840_vm10, %v2350_v32, 1073741824  ;;  %v905_v4 = vsel %vm841_vm14, %v2355_v61, 1073741824  ;;  %1084 = vmin.xlane.f32.xlu0 %v3034_v3  ;;  %v3888_v23 = vld [vmem:[#allocation4_spill] sm:$0xff]  ;;  %vm3795_vm10 = vcmp.gt.f32.partialorder %v3001_v0, %v3028_v22  ;;  %v3080_v3 = vpop.xlane.xlu0 %785 }
 0x1c3   : > { %3884 = vst [vmem:[#allocation77_spill] sm:$0xff] %v3036_v13  ;;  %3886 = vst [vmem:[#allocation3_spill] sm:$0xff] %v3046_v34  ;;  %1068 = vmin.xlane.f32.xlu1 %v3036_v13  ;;  %vm847_vm15 = vcmp.ge.f32.partialorder %v3888_v23, %v2952_v1  ;;  %v1337_v12 = vshra.s32 %v3046_v34, 16  ;;  %vm1318_vm4 = vcmp.lt.s32.totalorder %v904_v59, %v905_v4  ;;  %v3893_v13 = vld [vmem:[#allocation11_spill] sm:$0xff]  ;;  %v877_v54 = vsel %vm813_vm3, %v2355_v61, 1073741824 }
 0x1c4   : > { %3889 = vst [vmem:[#allocation4_spill] sm:$0xff] %v3065_v16  ;;  %vm816_vm14 = vcmp.ge.f32.partialorder %v3890_v19, %v2954_v10  ;;  %v3069_v5 = vsel %vm1318_vm4, %v904_v59, %v905_v4  ;;  %v1652_v24 = vsel %vm3795_vm10, %v3001_v0, %v3028_v22  ;;  %vm818_vm1 = vcmp.ge.f32.partialorder %v3892_v52, %v3003_v46  ;;  %v3894_v34 = vld [vmem:[#allocation7_spill] sm:$0xff]  ;;  %v3094_v22 = vld [vmem:[#allocation2 + $0xf0] sm:$0xff] }
 0x1c5   : > { %3891 = vst [vmem:[#allocation5_spill] sm:$0xff] %v3069_v5  ;;  %vm819_vm6 = vcmp.ge.f32.partialorder %v3893_v13, %v3003_v46  ;;  %vm817_vm12 = vcmp.ge.f32.partialorder %v3894_v34, %v2954_v10  ;;  %v3084_v18 = vcvt.s32.f32 %v1337_v12  ;;  %v1321_v59 = vshra.s32 %v3069_v5, 16  ;;  %1684 = vst.msk [vmem:[#allocation2 + $0xe8] sm:$0xff] %vm231_vm2, %v1652_v24 }
 0x1c6   : > { %vm3796_vm4 = vcmp.gt.f32.partialorder %v3003_v46, %v3056_v47  ;;  %v878_v4 = vsel %vm814_vm13, %v2350_v32, 1073741824  ;;  %3896 = vst [vmem:[#allocation11_spill] sm:$0xff] %v3094_v22  ;;  %v879_v24 = vsel %vm815_vm9, %v2355_v61, 1073741824  ;;  %v876_v5 = vsel %vm812_vm7, %v2350_v32, 1073741824 }
 0x1c7   : > { %3895 = vst [vmem:[#allocation9_spill] sm:$0xff] %v3084_v18  ;;  %v1637_v12 = vsel %vm3796_vm4, %v3003_v46, %v3056_v47  ;;  %1340 = vmin.xlane.f32.xlu0 %v3084_v18  ;;  %v3114_v15 = vcvt.s32.f32 %v1321_v59  ;;  %v3898_v47 = vld [vmem:[#allocation6_spill] sm:$0xff]  ;;  %vm1110_vm10 = vcmp.lt.s32.totalorder %v878_v4, %v879_v24  ;;  %vm1094_vm4 = vcmp.lt.s32.totalorder %v876_v5, %v877_v54  ;;  %v3903_v59 = vld [vmem:[#allocation12_spill] sm:$0xff] }
 0x1c8   : > { %vm848_vm13 = vcmp.ge.f32.partialorder %v3898_v47, %v3001_v0  ;;  %1669 = vst.msk [vmem:[#allocation2 + $0x70] sm:$0xff] %vm231_vm2, %v1637_v12  ;;  %vm850_vm7 = vcmp.ge.f32.partialorder %v3900_v33, %v3080_v3  ;;  %3901 = vst [vmem:[#allocation6_spill] sm:$0xff] %v3123_v51  ;;  %v3125_v43 = vsel %vm1110_vm10, %v878_v4, %v879_v24  ;;  %v910_v24 = vsel %vm846_vm0, %v2350_v32, 1073741824 }
 0x1c9   : > { %3897 = vst [vmem:[#allocation7_spill] sm:$0xff] %v3114_v15  ;;  %v3127_v48 = vsel %vm1094_vm4, %v876_v5, %v877_v54  ;;  %vm851_vm3 = vcmp.ge.f32.partialorder %v3903_v59, %v3080_v3  ;;  %vm3804_vm5 = vcmp.gt.f32.partialorder %v3080_v3, %v3094_v22  ;;  %1324 = vmin.xlane.f32.xlu1 %v3114_v15  ;;  %v1113_v12 = vshra.s32 %v3125_v43, 16  ;;  %v3143_v5 = vpop.xlane.xlu1 %788 }
 0x1ca   : > { %3902 = vst [vmem:[#allocation8_spill] sm:$0xff] %v3127_v48  ;;  %v1097_v18 = vshra.s32 %v3127_v48, 16  ;;  %v1653_v4 = vsel %vm3804_vm5, %v3080_v3, %v3094_v22  ;;  %vm820_vm10 = vcmp.ge.f32.partialorder %v2336_v2, %v3065_v16  ;;  %3904 = vst [vmem:[#allocation10_spill] sm:$0xff] %v3143_v5  ;;  %vm821_vm4 = vcmp.ge.f32.partialorder %v2342_v9, %v3065_v16  ;;  %v3158_v22 = vld [vmem:[#allocation2 + $0xf8] sm:$0xff] }
 0x1cb   : > { %1685 = vst.msk [vmem:[#allocation2 + $0xf0] sm:$0xff] %vm231_vm2, %v1653_v4  ;;  %vm1477_vm9 = vcmp.gt.f32.partialorder %v3065_v16, %v3123_v51  ;;  %v911_v54 = vsel %vm847_vm15, %v2355_v61, 1073741824  ;;  %3905 = vst [vmem:[#allocation12_spill] sm:$0xff] %v3158_v22  ;;  %v3160_v15 = vcvt.s32.f32 %v1113_v12  ;;  %v908_v23 = vsel %vm844_vm8, %v2350_v32, 1073741824 }
 0x1cc   : > { %v3162_v4 = vcvt.s32.f32 %v1097_v18  ;;  %v1638_v48 = vsel %vm1477_vm9, %v3065_v16, %v3123_v51  ;;  %vm1366_vm5 = vcmp.lt.s32.totalorder %v910_v24, %v911_v54  ;;  %v909_v18 = vsel %vm845_vm11, %v2355_v61, 1073741824 }
 0x1cd   : > { %1670 = vst.msk [vmem:[#allocation2 + $0x78] sm:$0xff] %vm231_vm2, %v1638_v48  ;;  %v3170_v25 = vsel %vm1366_vm5, %v910_v24, %v911_v54  ;;  %vm852_vm0 = vcmp.ge.f32.partialorder %v2338_v57, %v3143_v5  ;;  %1116 = vmin.xlane.f32.xlu0 %v3160_v15  ;;  %vm1350_vm5 = vcmp.lt.s32.totalorder %v908_v23, %v909_v18  ;;  %v882_v12 = vsel %vm818_vm1, %v2350_v32, 1073741824 }
 0x1ce   : > { %1100 = vmin.xlane.f32.xlu1 %v3162_v4  ;;  %v1369_v48 = vshra.s32 %v3170_v25, 16  ;;  %vm853_vm15 = vcmp.ge.f32.partialorder %v2344_v20, %v3143_v5  ;;  %vm1493_vm8 = vcmp.gt.f32.partialorder %v3143_v5, %v3158_v22  ;;  %v3189_v36 = vsel %vm1350_vm5, %v908_v23, %v909_v18  ;;  %v3907_v20 = vld [vmem:[#allocation19_spill] sm:$0xff] }
 0x1cf   : > { %v1654_v45 = vsel %vm1493_vm8, %v3143_v5, %v3158_v22  ;;  %v883_v24 = vsel %vm819_vm6, %v2355_v61, 1073741824  ;;  %v1353_v23 = vshra.s32 %v3189_v36, 16  ;;  %v880_v18 = vsel %vm816_vm14, %v2350_v32, 1073741824 }
 0x1d0   : > { %v3204_v54 = vcvt.s32.f32 %v1369_v48  ;;  %1686 = vst.msk [vmem:[#allocation2 + $0xf8] sm:$0xff] %vm231_vm2, %v1654_v45  ;;  %vm1142_vm11 = vcmp.lt.s32.totalorder %v882_v12, %v883_v24  ;;  %v881_v52 = vsel %vm817_vm12, %v2355_v61, 1073741824  ;;  %v914_v13 = vsel %vm850_vm7, %v2350_v32, 1073741824 }
 0x1d1   : > { %v3212_v22 = vsel %vm1142_vm11, %v882_v12, %v883_v24  ;;  %v915_v48 = vsel %vm851_vm3, %v2355_v61, 1073741824  ;;  %v3227_v19 = vcvt.s32.f32 %v1353_v23  ;;  %vm1126_vm1 = vcmp.lt.s32.totalorder %v880_v18, %v881_v52 }
 0x1d2   : > { %1372 = vmin.xlane.f32.xlu0 %v3204_v54  ;;  %v1145_v45 = vshra.s32 %v3212_v22, 16  ;;  %vm1398_vm6 = vcmp.lt.s32.totalorder %v914_v13, %v915_v48  ;;  %v3230_v34 = vsel %vm1126_vm1, %v880_v18, %v881_v52  ;;  %v912_v33 = vsel %vm848_vm13, %v2350_v32, 1073741824 }
 0x1d3   : > { %v3232_v12 = vsel %vm1398_vm6, %v914_v13, %v915_v48  ;;  %vm3906_vm12 = vcmp.ge.f32.partialorder %v3899_v60, %v3001_v0  ;;  %1356 = vmin.xlane.f32.xlu1 %v3227_v19  ;;  %v1129_v23 = vshra.s32 %v3230_v34, 16  ;;  %v884_v47 = vsel %vm820_vm10, %v2350_v32, 1073741824 }
 0x1d4   : > { %v913_v59 = vsel %vm3906_vm12, %v2355_v61, 1073741824  ;;  %v3243_v24 = vcvt.s32.f32 %v1145_v45  ;;  %v1401_v18 = vshra.s32 %v3232_v12, 16  ;;  %v885_v60 = vsel %vm821_vm4, %v2355_v61, 1073741824 }
 0x1d5   : > { %vm1382_vm14 = vcmp.lt.s32.totalorder %v912_v33, %v913_v59  ;;  %v916_v13 = vsel %vm852_vm0, %v2350_v32, 1073741824  ;;  %v3262_v48 = vcvt.s32.f32 %v1129_v23  ;;  %vm1158_vm13 = vcmp.lt.s32.totalorder %v884_v47, %v885_v60 }
 0x1d6   : > { %v3247_v52 = vsel %vm1382_vm14, %v912_v33, %v913_v59  ;;  %1148 = vmin.xlane.f32.xlu0 %v3243_v24  ;;  %v3264_v45 = vcvt.s32.f32 %v1401_v18  ;;  %v3267_v2 = vsel %vm1158_vm13, %v884_v47, %v885_v60  ;;  %v917_v9 = vsel %vm853_vm15, %v2355_v61, 1073741824 }
 0x1d7   : > { %v1385_v33 = vshra.s32 %v3247_v52, 16  ;;  %1132 = vmin.xlane.f32.xlu1 %v3262_v48  ;;  %vm1414_vm7 = vcmp.lt.s32.totalorder %v916_v13, %v917_v9  ;;  %v1161_v59 = vshra.s32 %v3267_v2, 16  ;;  %v920_v47 = vand.u32 65535, %v3907_v20 }
 0x1d8   : > { %v3274_v57 = vsel %vm1414_vm7, %v916_v13, %v917_v9  ;;  %v952_v16 = vand.u32 65535, %v2492_v35  ;;  %v936_v20 = vand.u32 65535, %v2508_v28  ;;  %v3909_v35 = vld [vmem:[#allocation37_spill] sm:$0xff] }
 0x1d9   : > { %v3277_v32 = vcvt.s32.f32 %v1385_v33  ;;  %v3281_v23 = vcvt.s32.f32 %v1161_v59  ;;  %v1417_v18 = vshra.s32 %v3274_v57, 16  ;;  %v922_v13 = vcvt.s32.f32 %v920_v47 }
 0x1da   : > { %1404 = vmin.xlane.f32.xlu0 %v3264_v45  ;;  %v1176_v33 = vand.u32 65535, %v2424_v17  ;;  %v954_v0 = vcvt.s32.f32 %v952_v16 }
 0x1db   : > { %1388 = vmin.xlane.f32.xlu1 %v3277_v32  ;;  %v3285_v61 = vcvt.s32.f32 %v1417_v18  ;;  %v3908_v18 = vld [vmem:[#allocation28_spill] sm:$0xff] }
 0x1dc   : > { %v1178_v5 = vcvt.s32.f32 %v1176_v33  ;;  %v1208_v33 = vand.u32 65535, %v2559_v41 }
 0x1df   : > { %1164 = vmin.xlane.f32.xlu1 %v3281_v23 }
 0x1e3   : > { %1420 = vmin.xlane.f32.xlu1 %v3285_v61 }
 0x21c   : > { %v3289_v60 = vpop.xlane.xlu0 %924 }
 0x21d   : > { %vm926_vm3 = vcmp.eq.f32.partialorder %v2416_v21, %v3289_v60 }
 0x21e   : > { %v927_v9 = vsel %vm926_vm3, %v922_v13, inf  ;;  %v938_v13 = vcvt.s32.f32 %v936_v20  ;;  %v3911_v20 = vld [vmem:[#allocation44_spill] sm:$0xff] }
 0x21f   : > { %928 = vmin.xlane.f32.xlu0 %v927_v9  ;;  %v1210_v9 = vcvt.s32.f32 %v1208_v33 }
 0x221   : > { %v3294_v59 = vpop.xlane.xlu0 %1180 }
 0x222   : > { %vm1182_vm10 = vcmp.eq.f32.partialorder %v3908_v18, %v3294_v59  ;;  %v3910_v18 = vld [vmem:[#allocation41_spill] sm:$0xff] }
 0x223   : > { %v1183_v51 = vsel %vm1182_vm10, %v1178_v5, inf  ;;  %v1192_v5 = vand.u32 65535, %v2418_v14  ;;  %v3912_v14 = vld [vmem:[#allocation38_spill] sm:$0xff] }
 0x224   : > { %1184 = vmin.xlane.f32.xlu0 %v1183_v51 }
 0x227   : > { %v3300_v47 = vpop.xlane.xlu0 %956 }
 0x228   : > { %vm958_vm4 = vcmp.eq.f32.partialorder %v2540_v8, %v3300_v47  ;;  %v1194_v8 = vcvt.s32.f32 %v1192_v5 }
 0x229   : > { %v959_v21 = vsel %vm958_vm4, %v954_v0, inf  ;;  %v3304_v17 = vpop.xlane.xlu1 %940  ;;  %v984_v0 = vand.u32 65535, %v2604_v27  ;;  %v1240_v27 = vand.u32 65535, %v2654_v40 }
 0x22a   : > { %960 = vmin.xlane.f32.xlu0 %v959_v21  ;;  %vm942_vm0 = vcmp.eq.f32.partialorder %v3909_v35, %v3304_v17  ;;  %v968_v21 = vand.u32 65535, %v3910_v18 }
 0x22b   : > { %v943_v51 = vsel %vm942_vm0, %v938_v13, inf  ;;  %v986_v33 = vcvt.s32.f32 %v984_v0  ;;  %v1016_v0 = vand.u32 65535, %v2709_v38  ;;  %v3913_v38 = vld [vmem:[#allocation57_spill] sm:$0xff] }
 0x22c   : > { %944 = vmin.xlane.f32.xlu1 %v943_v51  ;;  %v970_v5 = vcvt.s32.f32 %v968_v21 }
 0x22d   : > { %v3310_v28 = vpop.xlane.xlu0 %1212  ;;  %v3312_v16 = vpop.xlane.xlu1 %1196 }
 0x22e   : > { %vm1214_vm5 = vcmp.eq.f32.partialorder %v3911_v20, %v3310_v28  ;;  %vm1198_vm15 = vcmp.eq.f32.partialorder %v3912_v14, %v3312_v16  ;;  %v1242_v14 = vcvt.s32.f32 %v1240_v27 }
 0x22f   : > { %v1215_v41 = vsel %vm1214_vm5, %v1210_v9, inf  ;;  %v1199_v35 = vsel %vm1198_vm15, %v1194_v8, inf  ;;  %v1224_v9 = vand.u32 65535, %v2703_v26 }
 0x230   : > { %1216 = vmin.xlane.f32.xlu0 %v1215_v41  ;;  %1200 = vmin.xlane.f32.xlu1 %v1199_v35  ;;  %v1018_v35 = vcvt.s32.f32 %v1016_v0 }
 0x231   : > { %v3320_v13 = vpop.xlane.xlu0 %988  ;;  %v3322_v51 = vpop.xlane.xlu1 %972  ;;  %v1226_v21 = vcvt.s32.f32 %v1224_v9 }
 0x232   : > { %vm990_vm11 = vcmp.eq.f32.partialorder %v2668_v31, %v3320_v13  ;;  %vm974_vm1 = vcmp.eq.f32.partialorder %v2670_v49, %v3322_v51  ;;  %v1000_v49 = vand.u32 65535, %v2765_v58 }
 0x233   : > { %v991_v18 = vsel %vm990_vm11, %v986_v33, inf  ;;  %v975_v20 = vsel %vm974_vm1, %v970_v5, inf }
 0x234   : > { %992 = vmin.xlane.f32.xlu0 %v991_v18  ;;  %976 = vmin.xlane.f32.xlu1 %v975_v20  ;;  %v1002_v27 = vcvt.s32.f32 %v1000_v49  ;;  %v1256_v18 = vand.u32 65535, %v2814_v56  ;;  %v1048_v56 = vand.u32 65535, %v2874_v37  ;;  %v1304_v49 = vand.u32 65535, %v2926_v63 }
 0x235   : > { %v3330_v8 = vpop.xlane.xlu0 %1244 }
 0x236   : > { %vm1246_vm6 = vcmp.eq.f32.partialorder %v2711_v53, %v3330_v8  ;;  %v1272_v53 = vand.u32 65535, %v2800_v44  ;;  %v1258_v44 = vcvt.s32.f32 %v1256_v18  ;;  %v3915_v18 = vld [vmem:[#allocation73_spill] sm:$0xff] }
 0x237   : > { %v1247_v31 = vsel %vm1246_vm6, %v1242_v14, inf }
 0x238   : > { %v3335_v40 = vpop.xlane.xlu1 %1228  ;;  %1248 = vmin.xlane.f32.xlu0 %v1247_v31  ;;  %v1274_v20 = vcvt.s32.f32 %v1272_v53  ;;  %v3914_v53 = vld [vmem:[#allocation72_spill] sm:$0xff] }
 0x239   : > { %vm1230_vm12 = vcmp.eq.f32.partialorder %v2729_v30, %v3335_v40  ;;  %v3340_v41 = vpop.xlane.xlu0 %1020 }
 0x23a   : > { %v1231_v26 = vsel %vm1230_vm12, %v1226_v21, inf  ;;  %vm1022_vm14 = vcmp.eq.f32.partialorder %v3913_v38, %v3340_v41  ;;  %v1050_v21 = vcvt.s32.f32 %v1048_v56  ;;  %v1306_v38 = vcvt.s32.f32 %v1304_v49  ;;  %v3917_v56 = vld [vmem:[#allocation3_spill] sm:$0xff] }
 0x23b   : > { %1232 = vmin.xlane.f32.xlu1 %v1231_v26  ;;  %v1023_v33 = vsel %vm1022_vm14, %v1018_v35, inf }
 0x23c   : > { %v3345_v5 = vpop.xlane.xlu1 %1004  ;;  %1024 = vmin.xlane.f32.xlu0 %v1023_v33 }
 0x23d   : > { %vm1006_vm13 = vcmp.eq.f32.partialorder %v2792_v42, %v3345_v5  ;;  %v1032_v42 = vand.u32 65535, %v2881_v6 }
 0x23e   : > { %v1007_v30 = vsel %vm1006_vm13, %v1002_v27, inf  ;;  %v1080_v27 = vand.u32 65535, %v3914_v53 }
 0x23f   : > { %1008 = vmin.xlane.f32.xlu1 %v1007_v30  ;;  %v3350_v58 = vpop.xlane.xlu0 %1276  ;;  %v1064_v30 = vand.u32 65535, %v3915_v18  ;;  %v1112_v18 = vand.u32 65535, %v3125_v43 }
 0x240   : > { %v3352_v9 = vpop.xlane.xlu1 %1260  ;;  %vm1278_vm7 = vcmp.eq.f32.partialorder %v2824_v29, %v3350_v58  ;;  %v1034_v29 = vcvt.s32.f32 %v1032_v42  ;;  %v3918_v42 = vld [vmem:[#allocation76_spill] sm:$0xff] }
 0x241   : > { %v1279_v14 = vsel %vm1278_vm7, %v1274_v20, inf  ;;  %vm1262_vm3 = vcmp.eq.f32.partialorder %v2839_v62, %v3352_v9  ;;  %v1288_v62 = vand.u32 65535, %v2945_v7 }
 0x242   : > { %1280 = vmin.xlane.f32.xlu0 %v1279_v14  ;;  %v1263_v0 = vsel %vm1262_vm3, %v1258_v44, inf  ;;  %v1082_v14 = vcvt.s32.f32 %v1080_v27 }
 0x243   : > { %1264 = vmin.xlane.f32.xlu1 %v1263_v0  ;;  %v1336_v0 = vand.u32 65535, %v3917_v56 }
 0x245   : > { %v3360_v31 = vpop.xlane.xlu0 %1052 }
 0x246   : > { %v3363_v26 = vpop.xlane.xlu1 %1036  ;;  %vm1054_vm10 = vcmp.eq.f32.partialorder %v2910_v55, %v3360_v31  ;;  %v1290_v55 = vcvt.s32.f32 %v1288_v62 }
 0x247   : > { %v1055_v35 = vsel %vm1054_vm10, %v1050_v21, inf  ;;  %vm1038_vm4 = vcmp.eq.f32.partialorder %v2923_v50, %v3363_v26  ;;  %v3916_v50 = vld [vmem:[#allocation70_spill] sm:$0xff]  ;;  %v3919_v21 = vld [vmem:[#allocation77_spill] sm:$0xff] }
 0x248   : > { %1056 = vmin.xlane.f32.xlu0 %v1055_v35  ;;  %v1039_v37 = vsel %vm1038_vm4, %v1034_v29, inf  ;;  %v3920_v35 = vld [vmem:[#allocation5_spill] sm:$0xff] }
 0x249   : > { %1040 = vmin.xlane.f32.xlu1 %v1039_v37  ;;  %v1320_v62 = vand.u32 65535, %v3920_v35 }
 0x24a   : > { %v3370_v6 = vpop.xlane.xlu0 %1308 }
 0x24b   : > { %vm1310_vm0 = vcmp.eq.f32.partialorder %v2956_v11, %v3370_v6  ;;  %v3374_v63 = vpop.xlane.xlu1 %1292  ;;  %v1066_v11 = vcvt.s32.f32 %v1064_v30  ;;  %v1322_v27 = vcvt.s32.f32 %v1320_v62  ;;  %v3922_v30 = vld [vmem:[#allocation8_spill] sm:$0xff] }
 0x24c   : > { %v1311_v33 = vsel %vm1310_vm0, %v1306_v38, inf  ;;  %vm1294_vm5 = vcmp.eq.f32.partialorder %v3916_v50, %v3374_v63  ;;  %v1338_v38 = vcvt.s32.f32 %v1336_v0  ;;  %v1096_v50 = vand.u32 65535, %v3922_v30 }
 0x24d   : > { %1312 = vmin.xlane.f32.xlu0 %v1311_v33  ;;  %v1295_v7 = vsel %vm1294_vm5, %v1290_v55, inf  ;;  %v3921_v33 = vld [vmem:[#allocation9_spill] sm:$0xff]  ;;  %v1114_v0 = vcvt.s32.f32 %v1112_v18  ;;  %v1400_v18 = vand.u32 65535, %v3232_v12 }
 0x24e   : > { %1296 = vmin.xlane.f32.xlu1 %v1295_v7  ;;  %v3923_v7 = vld [vmem:[#allocation7_spill] sm:$0xff] }
 0x24f   : > { %v3380_v20 = vpop.xlane.xlu0 %1084 }
 0x250   : > { %v3382_v44 = vpop.xlane.xlu1 %1068  ;;  %vm1086_vm15 = vcmp.eq.f32.partialorder %v3918_v42, %v3380_v20  ;;  %v1098_v42 = vcvt.s32.f32 %v1096_v50 }
 0x251   : > { %vm1070_vm11 = vcmp.eq.f32.partialorder %v3919_v21, %v3382_v44  ;;  %v1087_v49 = vsel %vm1086_vm15, %v1082_v14, inf  ;;  %v1368_v21 = vand.u32 65535, %v3170_v25 }
 0x252   : > { %v1071_v29 = vsel %vm1070_vm11, %v1066_v11, inf  ;;  %1088 = vmin.xlane.f32.xlu0 %v1087_v49 }
 0x253   : > { %1072 = vmin.xlane.f32.xlu1 %v1071_v29  ;;  %v1352_v29 = vand.u32 65535, %v3189_v36  ;;  %v1370_v62 = vcvt.s32.f32 %v1368_v21  ;;  %v1416_v21 = vand.u32 65535, %v3274_v57 }
 0x254   : > { %v3390_v37 = vpop.xlane.xlu0 %1340 }
 0x255   : > { %vm1342_vm1 = vcmp.eq.f32.partialorder %v3921_v33, %v3390_v37  ;;  %v1354_v33 = vcvt.s32.f32 %v1352_v29 }
 0x256   : > { %v3394_v55 = vpop.xlane.xlu1 %1324  ;;  %v1343_v53 = vsel %vm1342_vm1, %v1338_v38, inf  ;;  %v1144_v38 = vand.u32 65535, %v3212_v22 }
 0x257   : > { %1344 = vmin.xlane.f32.xlu0 %v1343_v53  ;;  %vm1326_vm6 = vcmp.eq.f32.partialorder %v3923_v7, %v3394_v55  ;;  %v1402_v7 = vcvt.s32.f32 %v1400_v18 }
 0x258   : > { %v1327_v14 = vsel %vm1326_vm6, %v1322_v27, inf  ;;  %v1146_v27 = vcvt.s32.f32 %v1144_v38  ;;  %v1494_v38 = vld [vmem:[%s2028_s24] sm:$0xff] }
 0x259   : > { %1328 = vmin.xlane.f32.xlu1 %v1327_v14 }
 0x25a   : > { %v3400_v11 = vpop.xlane.xlu0 %1116 }
 0x25b   : > { %v3402_v56 = vpop.xlane.xlu1 %1100  ;;  %vm1118_vm12 = vcmp.eq.f32.partialorder %v3160_v15, %v3400_v11 }
 0x25c   : > { %vm1102_vm14 = vcmp.eq.f32.partialorder %v3162_v4, %v3402_v56  ;;  %v1119_v43 = vsel %vm1118_vm12, %v1114_v0, inf  ;;  %v1128_v4 = vand.u32 65535, %v3230_v34  ;;  %v1384_v34 = vand.u32 65535, %v3247_v52 }
 0x25d   : > { %v1103_v49 = vsel %vm1102_vm14, %v1098_v42, inf  ;;  %1120 = vmin.xlane.f32.xlu0 %v1119_v43  ;;  %v1160_v0 = vand.u32 65535, %v3267_v2  ;;  %v1418_v2 = vcvt.s32.f32 %v1416_v21 }
 0x25e   : > { %1104 = vmin.xlane.f32.xlu1 %v1103_v49  ;;  %v1130_v30 = vcvt.s32.f32 %v1128_v4  ;;  %v1386_v14 = vcvt.s32.f32 %v1384_v34  ;;  %v931_v49 = vcvt.f32.s32 %v3289_v60  ;;  %v3925_v4 = vld [vmem:[#allocation13_spill] sm:$0xff]  ;;  %v963_v60 = vcvt.f32.s32 %v3300_v47  ;;  %v3927_v34 = vld [vmem:[#allocation18_spill] sm:$0xff] }
 0x25f   : > { %v3410_v35 = vpop.xlane.xlu0 %1372  ;;  %v1162_v42 = vcvt.s32.f32 %v1160_v0 }
 0x260   : > { %vm1374_vm13 = vcmp.eq.f32.partialorder %v3204_v54, %v3410_v35  ;;  %v3415_v25 = vpop.xlane.xlu1 %1356  ;;  %v932_v57 = vshll.u32 %v931_v49, 16  ;;  %v3930_v49 = vld [vmem:[#allocation23_spill] sm:$0xff] }
 0x261   : > { %v1375_v15 = vsel %vm1374_vm13, %v1370_v62, inf  ;;  %vm1358_vm7 = vcmp.eq.f32.partialorder %v3227_v19, %v3415_v25 }
 0x262   : > { %1376 = vmin.xlane.f32.xlu0 %v1375_v15  ;;  %v1359_v36 = vsel %vm1358_vm7, %v1354_v33, inf  ;;  %v3924_v33 = vld [vmem:[#allocation14_spill] sm:$0xff] }
 0x263   : > { %v3420_v53 = vpop.xlane.xlu0 %1148  ;;  %1360 = vmin.xlane.f32.xlu1 %v1359_v36  ;;  %vm3926_vm11 = vcmp.gt.f32.partialorder %v3924_v33, %v3925_v4 }
 0x264   : > { %vm1150_vm3 = vcmp.eq.f32.partialorder %v3243_v24, %v3420_v53  ;;  %v3425_v22 = vpop.xlane.xlu1 %1132 }
 0x265   : > { %v1151_v54 = vsel %vm1150_vm3, %v1146_v27, inf  ;;  %vm1134_vm10 = vcmp.eq.f32.partialorder %v3262_v48, %v3425_v22 }
 0x266   : > { %1152 = vmin.xlane.f32.xlu0 %v1151_v54  ;;  %v1135_v19 = vsel %vm1134_vm10, %v1130_v30, inf  ;;  %v1510_v54 = vld [vmem:[%s2028_s24 + $0x80] sm:$0xff] }
 0x267   : > { %v3430_v50 = vpop.xlane.xlu0 %1404  ;;  %1136 = vmin.xlane.f32.xlu1 %v1135_v19  ;;  %v3928_v19 = vld [vmem:[#allocation17_spill] sm:$0xff] }
 0x268   : > { %vm1406_vm4 = vcmp.eq.f32.partialorder %v3264_v45, %v3430_v50  ;;  %v3434_v12 = vpop.xlane.xlu1 %1388  ;;  %vm3929_vm1 = vcmp.gt.f32.partialorder %v3927_v34, %v3928_v19  ;;  %v1251_v19 = vcvt.f32.s32 %v3330_v8  ;;  %v1498_v8 = vld [vmem:[%s2028_s24 + $0x20] sm:$0xff] }
 0x269   : > { %v1407_v24 = vsel %vm1406_vm4, %v1402_v7, inf  ;;  %vm1390_vm0 = vcmp.eq.f32.partialorder %v3277_v32, %v3434_v12  ;;  %v947_v7 = vcvt.f32.s32 %v3304_v17 }
 0x26a   : > { %1408 = vmin.xlane.f32.xlu0 %v1407_v24  ;;  %v1391_v52 = vsel %vm1390_vm0, %v1386_v14, inf  ;;  %v964_v14 = vshll.u32 %v963_v60, 16  ;;  %v1511_v60 = vld [vmem:[%s2028_s24 + $0x88] sm:$0xff] }
 0x26b   : > { %1392 = vmin.xlane.f32.xlu1 %v1391_v52  ;;  %v1496_v52 = vld [vmem:[%s2028_s24 + $0x10] sm:$0xff]  ;;  %v948_v47 = vshll.u32 %v947_v7, 16 }
 0x26c   : > { %v3439_v48 = vpop.xlane.xlu1 %1164 }
 0x26d   : > { %vm1166_vm5 = vcmp.eq.f32.partialorder %v3281_v23, %v3439_v48  ;;  %v1187_v23 = vcvt.f32.s32 %v3294_v59 }
 0x26e   : > { %v1167_v45 = vsel %vm1166_vm5, %v1162_v42, inf  ;;  %v1219_v42 = vcvt.f32.s32 %v3310_v28  ;;  %v995_v28 = vcvt.f32.s32 %v3320_v13 }
 0x26f   : > { %1168 = vmin.xlane.f32.xlu1 %v1167_v45  ;;  %v1188_v18 = vshll.u32 %v1187_v23, 16 }
 0x270   : > { %v3444_v43 = vpop.xlane.xlu1 %1420  ;;  %v1220_v23 = vshll.u32 %v1219_v42, 16  ;;  %v3940_v42 = vld [vmem:[#allocation15_spill] sm:$0xff] }
 0x271   : > { %vm1422_vm15 = vcmp.eq.f32.partialorder %v3285_v61, %v3444_v43 }
 0x272   : > { %v1423_v32 = vsel %vm1422_vm15, %v1418_v2, inf  ;;  %v1203_v2 = vcvt.f32.s32 %v3312_v16  ;;  %v3933_v16 = vld [vmem:[#allocation22_spill] sm:$0xff] }
 0x273   : > { %1424 = vmin.xlane.f32.xlu1 %v1423_v32 }
 0x274   : > { %v1204_v4 = vshll.u32 %v1203_v2, 16  ;;  %v1497_v2 = vld [vmem:[%s2028_s24 + $0x18] sm:$0xff] }
 0x2ac   : > { %v929_v29 = vpop.xlane.xlu0 %928 }
 0x2ad   : > { %v930_v62 = vcvt.f32.s32 %v929_v29  ;;  %v3931_v29 = vld [vmem:[#allocation21_spill] sm:$0xff] }
 0x2ae   : > { %vm3932_vm6 = vcmp.gt.f32.partialorder %v3930_v49, %v3931_v29 }
 0x2af   : > { %v933_v15 = vadd.s32 %v932_v57, %v930_v62  ;;  %v1495_v57 = vld [vmem:[%s2028_s24 + $0x8] sm:$0xff] }
 0x2b1   : > { %v1526_v36 = vsel %vm3926_vm11, %v933_v15, %v1494_v38  ;;  %v1185_v27 = vpop.xlane.xlu0 %1184  ;;  %v979_v38 = vcvt.f32.s32 %v3322_v51  ;;  %v996_v51 = vshll.u32 %v995_v28, 16  ;;  %v3943_v28 = vld [vmem:[#allocation30_spill] sm:$0xff] }
 0x2b2   : > { %1559 = vst.msk [vmem:[%s2028_s24] sm:$0xff] %vm231_vm2, %v1526_v36  ;;  %v1186_v61 = vcvt.f32.s32 %v1185_v27  ;;  %v3934_v36 = vld [vmem:[#allocation20_spill] sm:$0xff] }
 0x2b3   : > { %vm3935_vm12 = vcmp.gt.f32.partialorder %v3933_v16, %v3934_v36  ;;  %v980_v34 = vshll.u32 %v979_v38, 16 }
 0x2b4   : > { %v1189_v30 = vadd.s32 %v1188_v18, %v1186_v61 }
 0x2b6   : > { %v1542_v59 = vsel %vm3929_vm1, %v1189_v30, %v1510_v54  ;;  %v1512_v54 = vld [vmem:[%s2028_s24 + $0x90] sm:$0xff] }
 0x2b7   : > { %1575 = vst.msk [vmem:[%s2028_s24 + $0x80] sm:$0xff] %vm231_vm2, %v1542_v59  ;;  %v961_v24 = vpop.xlane.xlu0 %960 }
 0x2b8   : > { %v962_v0 = vcvt.f32.s32 %v961_v24  ;;  %v3936_v24 = vld [vmem:[#allocation26_spill] sm:$0xff] }
 0x2b9   : > { %v945_v45 = vpop.xlane.xlu1 %944 }
 0x2ba   : > { %v965_v21 = vadd.s32 %v964_v14, %v962_v0  ;;  %v946_v32 = vcvt.f32.s32 %v945_v45  ;;  %v3937_v14 = vld [vmem:[#allocation24_spill] sm:$0xff] }
 0x2bb   : > { %vm3938_vm14 = vcmp.gt.f32.partialorder %v3936_v24, %v3937_v14  ;;  %v1283_v24 = vcvt.f32.s32 %v3350_v58  ;;  %v3951_v14 = vld [vmem:[#allocation31_spill] sm:$0xff]  ;;  %v1499_v58 = vld [vmem:[%s2028_s24 + $0x28] sm:$0xff] }
 0x2bc   : > { %v1528_v17 = vsel %vm3932_vm6, %v965_v21, %v1496_v52  ;;  %v949_v62 = vadd.s32 %v948_v47, %v946_v32  ;;  %v3939_v52 = vld [vmem:[#allocation16_spill] sm:$0xff]  ;;  %v1235_v32 = vcvt.f32.s32 %v3335_v40  ;;  %v1514_v40 = vld [vmem:[%s2028_s24 + $0xa0] sm:$0xff] }
 0x2bd   : > { %1561 = vst.msk [vmem:[%s2028_s24 + $0x10] sm:$0xff] %vm231_vm2, %v1528_v17  ;;  %v1217_v15 = vpop.xlane.xlu0 %1216  ;;  %v1201_v33 = vpop.xlane.xlu1 %1200  ;;  %vm3941_vm13 = vcmp.gt.f32.partialorder %v3939_v52, %v3940_v42  ;;  %v1252_v17 = vshll.u32 %v1251_v19, 16 }
 0x2be   : > { %v1527_v27 = vsel %vm3935_vm12, %v949_v62, %v1495_v57  ;;  %v1218_v18 = vcvt.f32.s32 %v1217_v15  ;;  %v1202_v61 = vcvt.f32.s32 %v1201_v33  ;;  %v1027_v62 = vcvt.f32.s32 %v3340_v41  ;;  %v3945_v15 = vld [vmem:[#allocation27_spill] sm:$0xff]  ;;  %v3946_v33 = vld [vmem:[#allocation25_spill] sm:$0xff] }
 0x2bf   : > { %1560 = vst.msk [vmem:[%s2028_s24 + $0x8] sm:$0xff] %vm231_vm2, %v1527_v27  ;;  %vm3947_vm3 = vcmp.gt.f32.partialorder %v3945_v15, %v3946_v33  ;;  %v1236_v27 = vshll.u32 %v1235_v32, 16  ;;  %v1516_v15 = vld [vmem:[%s2028_s24 + $0xb0] sm:$0xff] }
 0x2c0   : > { %v1221_v13 = vadd.s32 %v1220_v23, %v1218_v18  ;;  %v1205_v30 = vadd.s32 %v1204_v4, %v1202_v61  ;;  %v3942_v23 = vld [vmem:[#allocation32_spill] sm:$0xff]  ;;  %v1011_v61 = vcvt.f32.s32 %v3345_v5 }
 0x2c1   : > { %v993_v59 = vpop.xlane.xlu0 %992  ;;  %v977_v7 = vpop.xlane.xlu1 %976  ;;  %vm3944_vm7 = vcmp.gt.f32.partialorder %v3942_v23, %v3943_v28  ;;  %v3958_v28 = vld [vmem:[#allocation34_spill] sm:$0xff] }
 0x2c2   : > { %v1544_v0 = vsel %vm3938_vm14, %v1221_v13, %v1512_v54  ;;  %v1543_v21 = vsel %vm3941_vm13, %v1205_v30, %v1511_v60  ;;  %v994_v45 = vcvt.f32.s32 %v993_v59  ;;  %v978_v47 = vcvt.f32.s32 %v977_v7  ;;  %v1513_v54 = vld [vmem:[%s2028_s24 + $0x98] sm:$0xff]  ;;  %v3948_v30 = vld [vmem:[#allocation35_spill] sm:$0xff]  ;;  %v1500_v7 = vld [vmem:[%s2028_s24 + $0x30] sm:$0xff] }
 0x2c3   : > { %1577 = vst.msk [vmem:[%s2028_s24 + $0x90] sm:$0xff] %vm231_vm2, %v1544_v0  ;;  %1576 = vst.msk [vmem:[%s2028_s24 + $0x88] sm:$0xff] %vm231_vm2, %v1543_v21  ;;  %v1028_v13 = vshll.u32 %v1027_v62, 16  ;;  %v3952_v0 = vld [vmem:[#allocation29_spill] sm:$0xff]  ;;  %v1012_v21 = vshll.u32 %v1011_v61, 16 }
 0x2c4   : > { %v997_v49 = vadd.s32 %v996_v51, %v994_v45  ;;  %v981_v29 = vadd.s32 %v980_v34, %v978_v47  ;;  %v3949_v51 = vld [vmem:[#allocation33_spill] sm:$0xff]  ;;  %vm3953_vm4 = vcmp.gt.f32.partialorder %v3951_v14, %v3952_v0  ;;  %v1267_v45 = vcvt.f32.s32 %v3352_v9  ;;  %v3957_v9 = vld [vmem:[#allocation36_spill] sm:$0xff]  ;;  %v1501_v0 = vld [vmem:[%s2028_s24 + $0x38] sm:$0xff] }
 0x2c5   : > { %v1249_v57 = vpop.xlane.xlu0 %1248  ;;  %vm3950_vm10 = vcmp.gt.f32.partialorder %v3948_v30, %v3949_v51  ;;  %vm3959_vm5 = vcmp.gt.f32.partialorder %v3957_v9, %v3958_v28  ;;  %v1315_v51 = vcvt.f32.s32 %v3370_v6  ;;  %v3967_v6 = vld [vmem:[#allocation50_spill] sm:$0xff]  ;;  %v3973_v9 = vld [vmem:[#allocation53_spill] sm:$0xff] }
 0x2c6   : > { %v1530_v38 = vsel %vm3944_vm7, %v997_v49, %v1498_v8  ;;  %v1529_v4 = vsel %vm3947_vm3, %v981_v29, %v1497_v2  ;;  %v1250_v16 = vcvt.f32.s32 %v1249_v57  ;;  %v3954_v8 = vld [vmem:[#allocation43_spill] sm:$0xff]  ;;  %v3955_v2 = vld [vmem:[#allocation40_spill] sm:$0xff]  ;;  %v1268_v23 = vshll.u32 %v1267_v45, 16 }
 0x2c7   : > { %1563 = vst.msk [vmem:[%s2028_s24 + $0x20] sm:$0xff] %vm231_vm2, %v1530_v38  ;;  %1562 = vst.msk [vmem:[%s2028_s24 + $0x18] sm:$0xff] %vm231_vm2, %v1529_v4  ;;  %vm3956_vm0 = vcmp.gt.f32.partialorder %v3954_v8, %v3955_v2  ;;  %v1059_v4 = vcvt.f32.s32 %v3360_v31  ;;  %v1091_v8 = vcvt.f32.s32 %v3380_v20  ;;  %v1075_v2 = vcvt.f32.s32 %v3382_v44  ;;  %v3972_v20 = vld [vmem:[#allocation54_spill] sm:$0xff] }
 0x2c8   : > { %v1233_v36 = vpop.xlane.xlu1 %1232  ;;  %v1253_v18 = vadd.s32 %v1252_v17, %v1250_v16  ;;  %v1284_v17 = vshll.u32 %v1283_v24, 16  ;;  %v1299_v24 = vcvt.f32.s32 %v3374_v63  ;;  %v3970_v63 = vld [vmem:[#allocation46_spill] sm:$0xff]  ;;  %vm3974_vm12 = vcmp.gt.f32.partialorder %v3972_v20, %v3973_v9 }
 0x2c9   : > { %v1234_v41 = vcvt.f32.s32 %v1233_v36  ;;  %v1025_v60 = vpop.xlane.xlu0 %1024  ;;  %v1043_v36 = vcvt.f32.s32 %v3363_v26  ;;  %v1060_v30 = vshll.u32 %v1059_v4, 16  ;;  %v1505_v20 = vld [vmem:[%s2028_s24 + $0x58] sm:$0xff]  ;;  %v1363_v9 = vcvt.f32.s32 %v3415_v25  ;;  %v1522_v25 = vld [vmem:[%s2028_s24 + $0xe0] sm:$0xff] }
 0x2ca   : > { %v1546_v34 = vsel %vm3950_vm10, %v1253_v18, %v1514_v40  ;;  %v1026_v59 = vcvt.f32.s32 %v1025_v60  ;;  %v1515_v40 = vld [vmem:[%s2028_s24 + $0xa8] sm:$0xff]  ;;  %v3960_v18 = vld [vmem:[#allocation47_spill] sm:$0xff] }
 0x2cb   : > { %v1237_v19 = vadd.s32 %v1236_v27, %v1234_v41  ;;  %1579 = vst.msk [vmem:[%s2028_s24 + $0xa0] sm:$0xff] %vm231_vm2, %v1546_v34  ;;  %v3961_v41 = vld [vmem:[#allocation45_spill] sm:$0xff]  ;;  %v3964_v60 = vld [vmem:[#allocation39_spill] sm:$0xff] }
 0x2cc   : > { %v1029_v52 = vadd.s32 %v1028_v13, %v1026_v59  ;;  %v1009_v42 = vpop.xlane.xlu1 %1008  ;;  %vm3962_vm15 = vcmp.gt.f32.partialorder %v3960_v18, %v3961_v41  ;;  %v1502_v59 = vld [vmem:[%s2028_s24 + $0x40] sm:$0xff] }
 0x2cd   : > { %v1545_v5 = vsel %vm3953_vm4, %v1237_v19, %v1513_v54  ;;  %v1010_v47 = vcvt.f32.s32 %v1009_v42  ;;  %v3963_v54 = vld [vmem:[#allocation42_spill] sm:$0xff]  ;;  %v1044_v19 = vshll.u32 %v1043_v36, 16  ;;  %v1316_v42 = vshll.u32 %v1315_v51, 16  ;;  %v3976_v36 = vld [vmem:[#allocation49_spill] sm:$0xff] }
 0x2ce   : > { %1578 = vst.msk [vmem:[%s2028_s24 + $0x98] sm:$0xff] %vm231_vm2, %v1545_v5  ;;  %v1532_v32 = vsel %vm3956_vm0, %v1029_v52, %v1500_v7  ;;  %vm3965_vm11 = vcmp.gt.f32.partialorder %v3963_v54, %v3964_v60  ;;  %v1503_v54 = vld [vmem:[%s2028_s24 + $0x48] sm:$0xff]  ;;  %v1331_v60 = vcvt.f32.s32 %v3394_v55  ;;  %v3978_v51 = vld [vmem:[#allocation61_spill] sm:$0xff] }
 0x2cf   : > { %1565 = vst.msk [vmem:[%s2028_s24 + $0x30] sm:$0xff] %vm231_vm2, %v1532_v32  ;;  %v1013_v49 = vadd.s32 %v1012_v21, %v1010_v47  ;;  %v1281_v29 = vpop.xlane.xlu0 %1280  ;;  %v3966_v21 = vld [vmem:[#allocation52_spill] sm:$0xff]  ;;  %v1520_v55 = vld [vmem:[%s2028_s24 + $0xd0] sm:$0xff] }
 0x2d0   : > { %v1282_v57 = vcvt.f32.s32 %v1281_v29  ;;  %v1265_v62 = vpop.xlane.xlu1 %1264  ;;  %vm3968_vm1 = vcmp.gt.f32.partialorder %v3966_v21, %v3967_v6  ;;  %v3969_v32 = vld [vmem:[#allocation48_spill] sm:$0xff] }
 0x2d1   : > { %v1531_v38 = vsel %vm3959_vm5, %v1013_v49, %v1499_v58  ;;  %v1266_v33 = vcvt.f32.s32 %v1265_v62  ;;  %vm3971_vm6 = vcmp.gt.f32.partialorder %v3969_v32, %v3970_v63  ;;  %v1518_v49 = vld [vmem:[%s2028_s24 + $0xc0] sm:$0xff]  ;;  %v1519_v6 = vld [vmem:[%s2028_s24 + $0xc8] sm:$0xff] }
 0x2d2   : > { %1564 = vst.msk [vmem:[%s2028_s24 + $0x28] sm:$0xff] %vm231_vm2, %v1531_v38  ;;  %v1285_v16 = vadd.s32 %v1284_v17, %v1282_v57  ;;  %v1300_v17 = vshll.u32 %v1299_v24, 16  ;;  %v1092_v38 = vshll.u32 %v1091_v8, 16 }
 0x2d3   : > { %v1269_v27 = vadd.s32 %v1268_v23, %v1266_v33  ;;  %v1517_v23 = vld [vmem:[%s2028_s24 + $0xb8] sm:$0xff] }
 0x2d4   : > { %v1548_v61 = vsel %vm3962_vm15, %v1285_v16, %v1516_v15  ;;  %v1076_v15 = vshll.u32 %v1075_v2, 16  ;;  %v1347_v16 = vcvt.f32.s32 %v3390_v37 }
 0x2d5   : > { %1581 = vst.msk [vmem:[%s2028_s24 + $0xb0] sm:$0xff] %vm231_vm2, %v1548_v61  ;;  %v1547_v13 = vsel %vm3965_vm11, %v1269_v27, %v1515_v40  ;;  %v1057_v31 = vpop.xlane.xlu0 %1056  ;;  %v3975_v40 = vld [vmem:[#allocation51_spill] sm:$0xff]  ;;  %v1504_v61 = vld [vmem:[%s2028_s24 + $0x50] sm:$0xff] }
 0x2d6   : > { %1580 = vst.msk [vmem:[%s2028_s24 + $0xa8] sm:$0xff] %vm231_vm2, %v1547_v13  ;;  %v1058_v26 = vcvt.f32.s32 %v1057_v31  ;;  %v1041_v34 = vpop.xlane.xlu1 %1040  ;;  %vm3977_vm14 = vcmp.gt.f32.partialorder %v3975_v40, %v3976_v36  ;;  %v1348_v37 = vshll.u32 %v1347_v16, 16  ;;  %v3993_v40 = vld [vmem:[#allocation64_spill] sm:$0xff]  ;;  %v3994_v36 = vld [vmem:[#allocation65_spill] sm:$0xff] }
 0x2d7   : > { %v1042_v7 = vcvt.f32.s32 %v1041_v34  ;;  %vm3995_vm0 = vcmp.gt.f32.partialorder %v3993_v40, %v3994_v36 }
 0x2d8   : > { %v1061_v14 = vadd.s32 %v1060_v30, %v1058_v26  ;;  %v3979_v26 = vld [vmem:[#allocation60_spill] sm:$0xff] }
 0x2d9   : > { %v1045_v5 = vadd.s32 %v1044_v19, %v1042_v7  ;;  %vm3980_vm13 = vcmp.gt.f32.partialorder %v3978_v51, %v3979_v26  ;;  %v3981_v19 = vld [vmem:[#allocation56_spill] sm:$0xff]  ;;  %v3996_v51 = vld [vmem:[#allocation69_spill] sm:$0xff] }
 0x2da   : > { %v1313_v52 = vpop.xlane.xlu0 %1312  ;;  %v1534_v45 = vsel %vm3968_vm1, %v1061_v14, %v1502_v59  ;;  %v3982_v59 = vld [vmem:[#allocation55_spill] sm:$0xff]  ;;  %v1123_v14 = vcvt.f32.s32 %v3400_v11  ;;  %vm3997_vm5 = vcmp.gt.f32.partialorder %v2952_v1, %v3996_v51  ;;  %v1507_v1 = vld [vmem:[%s2028_s24 + $0x68] sm:$0xff] }
 0x2db   : > { %v1314_v47 = vcvt.f32.s32 %v1313_v52  ;;  %1567 = vst.msk [vmem:[%s2028_s24 + $0x40] sm:$0xff] %vm231_vm2, %v1534_v45  ;;  %v1533_v58 = vsel %vm3971_vm6, %v1045_v5, %v1501_v0  ;;  %v1297_v29 = vpop.xlane.xlu1 %1296  ;;  %vm3983_vm7 = vcmp.gt.f32.partialorder %v3981_v19, %v3982_v59  ;;  %v1107_v0 = vcvt.f32.s32 %v3402_v56  ;;  %v3984_v45 = vld [vmem:[#allocation63_spill] sm:$0xff] }
 0x2dc   : > { %1566 = vst.msk [vmem:[%s2028_s24 + $0x38] sm:$0xff] %vm231_vm2, %v1533_v58  ;;  %v1298_v62 = vcvt.f32.s32 %v1297_v29  ;;  %v1332_v52 = vshll.u32 %v1331_v60, 16  ;;  %v1124_v2 = vshll.u32 %v1123_v14, 16  ;;  %v1379_v58 = vcvt.f32.s32 %v3410_v35  ;;  %v3988_v29 = vld [vmem:[#allocation58_spill] sm:$0xff] }
 0x2dd   : > { %v1317_v57 = vadd.s32 %v1316_v42, %v1314_v47  ;;  %v3985_v47 = vld [vmem:[#allocation62_spill] sm:$0xff]  ;;  %v1108_v56 = vshll.u32 %v1107_v0, 16  ;;  %v1155_v35 = vcvt.f32.s32 %v3420_v53  ;;  %v1364_v53 = vshll.u32 %v1363_v9, 16 }
 0x2de   : > { %v1301_v28 = vadd.s32 %v1300_v17, %v1298_v62  ;;  %vm3986_vm3 = vcmp.gt.f32.partialorder %v3984_v45, %v3985_v47  ;;  %v1395_v59 = vcvt.f32.s32 %v3434_v12  ;;  %v3998_v14 = vld [vmem:[#allocation66_spill] sm:$0xff] }
 0x2df   : > { %v1550_v44 = vsel %vm3974_vm12, %v1317_v57, %v1518_v49  ;;  %v1089_v33 = vpop.xlane.xlu0 %1088  ;;  %v3987_v49 = vld [vmem:[#allocation59_spill] sm:$0xff]  ;;  %vm3999_vm15 = vcmp.gt.f32.partialorder %v2902_v39, %v3998_v14  ;;  %v1524_v39 = vld [vmem:[%s2028_s24 + $0xf0] sm:$0xff] }
 0x2e0   : > { %1583 = vst.msk [vmem:[%s2028_s24 + $0xc0] sm:$0xff] %vm231_vm2, %v1550_v44  ;;  %v1073_v4 = vpop.xlane.xlu1 %1072  ;;  %v1549_v27 = vsel %vm3977_vm14, %v1301_v28, %v1517_v23  ;;  %v1090_v18 = vcvt.f32.s32 %v1089_v33  ;;  %vm3989_vm10 = vcmp.gt.f32.partialorder %v3987_v49, %v3988_v29  ;;  %v1506_v23 = vld [vmem:[%s2028_s24 + $0x60] sm:$0xff]  ;;  %v1396_v45 = vshll.u32 %v1395_v59, 16 }
 0x2e1   : > { %v1074_v41 = vcvt.f32.s32 %v1073_v4  ;;  %1582 = vst.msk [vmem:[%s2028_s24 + $0xb8] sm:$0xff] %vm231_vm2, %v1549_v27  ;;  %v3990_v33 = vld [vmem:[#allocation67_spill] sm:$0xff]  ;;  %v3991_v4 = vld [vmem:[#allocation68_spill] sm:$0xff] }
 0x2e2   : > { %v1093_v13 = vadd.s32 %v1092_v38, %v1090_v18  ;;  %vm3992_vm4 = vcmp.gt.f32.partialorder %v3990_v33, %v3991_v4  ;;  %v1525_v33 = vld [vmem:[%s2028_s24 + $0xf8] sm:$0xff] }
 0x2e3   : > { %v1077_v31 = vadd.s32 %v1076_v15, %v1074_v41  ;;  %v1380_v15 = vshll.u32 %v1379_v58, 16 }
 0x2e4   : > { %v1345_v30 = vpop.xlane.xlu0 %1344  ;;  %v1536_v34 = vsel %vm3980_vm13, %v1093_v13, %v1504_v61  ;;  %v1139_v61 = vcvt.f32.s32 %v3425_v22  ;;  %v1156_v13 = vshll.u32 %v1155_v35, 16  ;;  %v1508_v22 = vld [vmem:[%s2028_s24 + $0x70] sm:$0xff] }
 0x2e5   : > { %v1535_v7 = vsel %vm3983_vm7, %v1077_v31, %v1503_v54  ;;  %v1346_v24 = vcvt.f32.s32 %v1345_v30  ;;  %1569 = vst.msk [vmem:[%s2028_s24 + $0x50] sm:$0xff] %vm231_vm2, %v1536_v34  ;;  %v1521_v31 = vld [vmem:[%s2028_s24 + $0xd8] sm:$0xff] }
 0x2e6   : > { %1568 = vst.msk [vmem:[%s2028_s24 + $0x48] sm:$0xff] %vm231_vm2, %v1535_v7  ;;  %v1329_v5 = vpop.xlane.xlu1 %1328 }
 0x2e7   : > { %v1349_v42 = vadd.s32 %v1348_v37, %v1346_v24  ;;  %v1330_v21 = vcvt.f32.s32 %v1329_v5  ;;  %v1411_v37 = vcvt.f32.s32 %v3430_v50  ;;  %v1140_v24 = vshll.u32 %v1139_v61, 16 }
 0x2e9   : > { %v1552_v8 = vsel %vm3986_vm3, %v1349_v42, %v1520_v55  ;;  %v1333_v11 = vadd.s32 %v1332_v52, %v1330_v21  ;;  %v1412_v12 = vshll.u32 %v1411_v37, 16  ;;  %v4000_v52 = vld [vmem:[#allocation78_spill] sm:$0xff] }
 0x2ea   : > { %1585 = vst.msk [vmem:[%s2028_s24 + $0xd0] sm:$0xff] %vm231_vm2, %v1552_v8  ;;  %v1121_v32 = vpop.xlane.xlu0 %1120  ;;  %vm4001_vm11 = vcmp.gt.f32.partialorder %v3003_v46, %v4000_v52  ;;  %v1171_v8 = vcvt.f32.s32 %v3439_v48  ;;  %v1523_v46 = vld [vmem:[%s2028_s24 + $0xe8] sm:$0xff] }
 0x2eb   : > { %v1105_v63 = vpop.xlane.xlu1 %1104  ;;  %v1551_v17 = vsel %vm3989_vm10, %v1333_v11, %v1519_v6  ;;  %v1122_v57 = vcvt.f32.s32 %v1121_v32  ;;  %v4002_v11 = vld [vmem:[#allocation71_spill] sm:$0xff] }
 0x2ec   : > { %v1106_v62 = vcvt.f32.s32 %v1105_v63  ;;  %1584 = vst.msk [vmem:[%s2028_s24 + $0xc8] sm:$0xff] %vm231_vm2, %v1551_v17  ;;  %vm4003_vm1 = vcmp.gt.f32.partialorder %v2954_v10, %v4002_v11  ;;  %v4004_v63 = vld [vmem:[#allocation11_spill] sm:$0xff]  ;;  %v1172_v48 = vshll.u32 %v1171_v8, 16  ;;  %v1427_v10 = vcvt.f32.s32 %v3444_v43  ;;  %v4006_v17 = vld [vmem:[#allocation74_spill] sm:$0xff] }
 0x2ed   : > { %v1125_v44 = vadd.s32 %v1124_v2, %v1122_v57  ;;  %vm4005_vm6 = vcmp.gt.f32.partialorder %v3080_v3, %v4004_v63  ;;  %v4007_v57 = vld [vmem:[#allocation75_spill] sm:$0xff] }
 0x2ee   : > { %v1109_v28 = vadd.s32 %v1108_v56, %v1106_v62  ;;  %vm4008_vm12 = vcmp.gt.f32.partialorder %v4006_v17, %v4007_v57 }
 0x2ef   : > { %v1377_v38 = vpop.xlane.xlu0 %1376  ;;  %v1538_v16 = vsel %vm3992_vm4, %v1125_v44, %v1506_v23  ;;  %v1428_v44 = vshll.u32 %v1427_v10, 16 }
 0x2f0   : > { %v1537_v27 = vsel %vm3995_vm0, %v1109_v28, %v1505_v20  ;;  %v1378_v18 = vcvt.f32.s32 %v1377_v38  ;;  %1571 = vst.msk [vmem:[%s2028_s24 + $0x60] sm:$0xff] %vm231_vm2, %v1538_v16  ;;  %v1361_v41 = vpop.xlane.xlu1 %1360  ;;  %v1509_v20 = vld [vmem:[%s2028_s24 + $0x78] sm:$0xff] }
 0x2f1   : > { %1570 = vst.msk [vmem:[%s2028_s24 + $0x58] sm:$0xff] %vm231_vm2, %v1537_v27  ;;  %v1362_v60 = vcvt.f32.s32 %v1361_v41 }
 0x2f2   : > { %v1381_v54 = vadd.s32 %v1380_v15, %v1378_v18 }
 0x2f3   : > { %v1153_v30 = vpop.xlane.xlu0 %1152  ;;  %v1365_v34 = vadd.s32 %v1364_v53, %v1362_v60 }
 0x2f4   : > { %v1554_v26 = vsel %vm3997_vm5, %v1381_v54, %v1522_v25  ;;  %v1154_v19 = vcvt.f32.s32 %v1153_v30  ;;  %v1137_v7 = vpop.xlane.xlu1 %1136 }
 0x2f5   : > { %1587 = vst.msk [vmem:[%s2028_s24 + $0xe0] sm:$0xff] %vm231_vm2, %v1554_v26  ;;  %v1553_v0 = vsel %vm3999_vm15, %v1365_v34, %v1521_v31  ;;  %v1138_v55 = vcvt.f32.s32 %v1137_v7 }
 0x2f6   : > { %v1157_v50 = vadd.s32 %v1156_v13, %v1154_v19  ;;  %1586 = vst.msk [vmem:[%s2028_s24 + $0xd8] sm:$0xff] %vm231_vm2, %v1553_v0 }
 0x2f7   : > { %v1409_v5 = vpop.xlane.xlu0 %1408  ;;  %v1141_v21 = vadd.s32 %v1140_v24, %v1138_v55 }
 0x2f8   : > { %v1540_v42 = vsel %vm4001_vm11, %v1157_v50, %v1508_v22  ;;  %v1410_v6 = vcvt.f32.s32 %v1409_v5  ;;  %v1393_v47 = vpop.xlane.xlu1 %1392 }
 0x2f9   : > { %1573 = vst.msk [vmem:[%s2028_s24 + $0x70] sm:$0xff] %vm231_vm2, %v1540_v42  ;;  %v1539_v2 = vsel %vm4003_vm1, %v1141_v21, %v1507_v1  ;;  %v1394_v32 = vcvt.f32.s32 %v1393_v47 }
 0x2fa   : > { %v1413_v56 = vadd.s32 %v1412_v12, %v1410_v6  ;;  %1572 = vst.msk [vmem:[%s2028_s24 + $0x68] sm:$0xff] %vm231_vm2, %v1539_v2 }
 0x2fb   : > { %v1397_v49 = vadd.s32 %v1396_v45, %v1394_v32 }
 0x2fc   : > { %v1556_v58 = vsel %vm4005_vm6, %v1413_v56, %v1524_v39  ;;  %v1169_v29 = vpop.xlane.xlu1 %1168 }
 0x2fd   : > { %1589 = vst.msk [vmem:[%s2028_s24 + $0xf0] sm:$0xff] %vm231_vm2, %v1556_v58  ;;  %v1555_v62 = vsel %vm4008_vm12, %v1397_v49, %v1523_v46  ;;  %v1170_v23 = vcvt.f32.s32 %v1169_v29 }
 0x2fe   : > { %1588 = vst.msk [vmem:[%s2028_s24 + $0xe8] sm:$0xff] %vm231_vm2, %v1555_v62 }
 0x2ff   : > { %v1173_v3 = vadd.s32 %v1172_v48, %v1170_v23 }
 0x300   : > { %v1425_v9 = vpop.xlane.xlu1 %1424 }
 0x301   : > { %v1541_v38 = vsel %vm1477_vm9, %v1173_v3, %v1509_v20  ;;  %v1426_v15 = vcvt.f32.s32 %v1425_v9 }
 0x302   : > { %1574 = vst.msk [vmem:[%s2028_s24 + $0x78] sm:$0xff] %vm231_vm2, %v1541_v38 }
 0x303   : > { %v1429_v43 = vadd.s32 %v1428_v44, %v1426_v15 }
 0x305   : > { %v1557_v40 = vsel %vm1493_vm8, %v1429_v43, %v1525_v33 }
 0x306   : > { %1590 = vst.msk [vmem:[%s2028_s24 + $0xf8] sm:$0xff] %vm231_vm2, %v1557_v40 }
 0x307 PF: > { %s12_s11 = sadd.s32 1, %s1927_s11   ;;  %s4013_s9 = smov %s1923_s10 }
 0x308   : > { %p9_p5 = scmp.ge.s32.totalorder %s12_s11, 4   ;;  %s4014_s10 = smov %s4016_s12 }
 0x30a   :  { %11 = sbr.rel (!%p9_p5) target bundleno = 2 (0x2), region = 65 }

</bundles_post_ra>
